<compile_context>
chip_gen: v5e
topology: v5e:2x2
jax: 0.10.0
libtpu: 0.0.40
codegen_flags: <defaults>
</compile_context>

<pallas_src>
import jax
import jax.numpy as jnp
from jax.experimental import pallas as pl
from jax.experimental.pallas import tpu as pltpu

BN_EPS = 1e-5
LANE = 128


def _fused_mlp_kernel(*refs):
    """refs = (x_ref, w0_ref, ..., w{L-1}_ref, o_ref); everything VMEM-resident.

    Weights come pre-transposed as [in_features, out_features] in bf16
    (values are exactly +/-1); they are upcast to f32 so the arithmetic is
    identical to the f32 reference. Hidden layers compute
    relu(batchnorm(x @ W)); the final layer is a plain x @ W.
    BatchNorm uses per-feature batch statistics with biased variance and
    eps=1e-5 — valid only because the batch dimension is never tiled.
    """
    x_ref, *w_refs, o_ref = refs

    h = x_ref[...]  # (B, in_dim) f32
    for w_ref in w_refs[:-1]:
        y = jnp.dot(h, w_ref[...].astype(jnp.float32),
                    preferred_element_type=jnp.float32)
        mean = jnp.mean(y, axis=0, keepdims=True)
        var = jnp.mean((y - mean) ** 2, axis=0, keepdims=True)  # biased var
        h = jnp.maximum((y - mean) * jax.lax.rsqrt(var + BN_EPS), 0.0)

    out = jnp.dot(h, w_refs[-1][...].astype(jnp.float32),
                  preferred_element_type=jnp.float32)
    o_ref[...] = out.astype(o_ref.dtype)


def mlp_forward(x_nchw, weights):
    """Fused MLP forward.

    weights: list of arrays, each PyTorch-style [out_features, in_features].
    Returns [B, out_dim] float32.
    """
    B = x_nchw.shape[0]
    x = x_nchw.reshape(B, -1).astype(jnp.float32)  # torch.flatten(x, 1)

    out_dim = weights[-1].shape[0]
    # Pre-transpose to [in, out] (no in-kernel .T) and store as bf16 (+/-1 exact).
    wts = [w.T.astype(jnp.bfloat16) for w in weights]

    # Lane-dense final output: pad out_dim up to a multiple of 128 with zero
    # columns; slice back after the kernel.
    out_pad = max(LANE, ((out_dim + LANE - 1) // LANE) * LANE)
    if out_pad != out_dim:
        wts[-1] = jnp.pad(wts[-1], ((0, 0), (0, out_pad - out_dim)))

    n_in = 1 + len(wts)
    out = pl.pallas_call(
        _fused_mlp_kernel,
        out_shape=jax.ShapeDtypeStruct((B, out_pad), jnp.float32),
        in_specs=[pl.BlockSpec(memory_space=pltpu.MemorySpace.VMEM)] * n_in,
        out_specs=pl.BlockSpec(memory_space=pltpu.MemorySpace.VMEM),
        compiler_params=pltpu.CompilerParams(
            vmem_limit_bytes=32 * 1024 * 1024,
        ),
    )(x, *wts)

    return out[:, :out_dim]


def _init_weights(key, in_dim, hid_dim, out_dim, depth):
    """normal(0, 0.01) then sign() -> +/-1 (training_space='binary')."""
    dims = []
    for d in range(depth - 1):
        dims.append((hid_dim, in_dim if d == 0 else hid_dim))
    dims.append((out_dim, hid_dim))
    keys = jax.random.split(key, len(dims))
    weights = []
    for k, shape in zip(keys, dims):
        w = 0.01 * jax.random.normal(k, shape, dtype=jnp.float32)
        w = jnp.where(w >= 0.0, 1.0, -1.0).astype(jnp.float32)
        weights.append(w)
    return weights


def _reference_forward(x_nchw, weights):
    x = x_nchw.reshape(x_nchw.shape[0], -1)
    for w in weights[:-1]:
        y = x @ w.T
        mean = jnp.mean(y, axis=0, keepdims=True)
        var = jnp.mean((y - mean) ** 2, axis=0, keepdims=True)
        y = (y - mean) / jnp.sqrt(var + BN_EPS)
        x = jnp.maximum(y, 0.0)
    return x @ weights[-1].T


if __name__ == "__main__":
    # Small shapes consistent with the module's forward (flatten + MLP).
    B, C, H, W = 8, 4, 16, 16
    in_dim, hid_dim, out_dim, depth = C * H * W, 256, 64, 4

    key = jax.random.PRNGKey(0)
    kx, kw = jax.random.split(key)
    x = jax.random.normal(kx, (B, C, H, W), dtype=jnp.float32)
    weights = _init_weights(kw, in_dim, hid_dim, out_dim, depth)

    out = mlp_forward(x, weights)
    out = jax.block_until_ready(out)

    ref = _reference_forward(x, weights)
    assert out.shape == (B, out_dim)
    assert jnp.allclose(out, ref, atol=1e-3, rtol=1e-3), "mismatch vs reference"

    print("KERNEL_OK")
</pallas_src>

<mosaic_0001>
module attributes {stable_mosaic.version = 11 : i64} {
  func.func @_fused_mlp_kernel(%arg0: memref<8x1024xf32, #tpu.memory_space<vmem>>, %arg1: memref<1024x256xbf16, #tpu.memory_space<vmem>>, %arg2: memref<256x256xbf16, #tpu.memory_space<vmem>>, %arg3: memref<256x256xbf16, #tpu.memory_space<vmem>>, %arg4: memref<256x128xbf16, #tpu.memory_space<vmem>>, %arg5: memref<8x128xf32, #tpu.memory_space<vmem>>) attributes {dimension_semantics = [], scalar_prefetch = 0 : i64, scratch_operands = 0 : i64, tpu.core_type = #tpu.core_type<tc>} {
    %c0 = arith.constant 0 : index
    %c0_0 = arith.constant 0 : index
    %0 = vector.load %arg0[%c0, %c0_0] : memref<8x1024xf32, #tpu.memory_space<vmem>>, vector<8x1024xf32>
    %c0_1 = arith.constant 0 : index
    %c0_2 = arith.constant 0 : index
    %1 = vector.load %arg1[%c0_1, %c0_2] : memref<1024x256xbf16, #tpu.memory_space<vmem>>, vector<1024x256xbf16>
    %2 = arith.extf %1 : vector<1024x256xbf16> to vector<1024x256xf32>
    %cst = arith.constant dense<0.000000e+00> : vector<8x256xf32>
    %3 = tpu.matmul %0, %2, %cst {dimension_numbers = #tpu.dot_dimension_numbers<[1], [0], [0], [1], [0, 0, 1, 1], [], []>} : vector<8x1024xf32>, vector<1024x256xf32>, vector<8x256xf32> -> vector<8x256xf32>
    %cst_3 = arith.constant dense<0.000000e+00> : vector<256xf32>
    %4 = vector.multi_reduction <add>, %3, %cst_3 [0] : vector<8x256xf32> to vector<256xf32>
    %5 = vector.shape_cast %4 : vector<256xf32> to vector<1x256xf32>
    %cst_4 = arith.constant 8.000000e+00 : f32
    %6 = vector.broadcast %cst_4 : f32 to vector<1x256xf32>
    %7 = arith.divf %5, %6 : vector<1x256xf32>
    %8 = vector.broadcast %7 : vector<1x256xf32> to vector<8x256xf32>
    %9 = arith.subf %3, %8 : vector<8x256xf32>
    %10 = arith.mulf %9, %9 : vector<8x256xf32>
    %cst_5 = arith.constant dense<0.000000e+00> : vector<256xf32>
    %11 = vector.multi_reduction <add>, %10, %cst_5 [0] : vector<8x256xf32> to vector<256xf32>
    %12 = vector.shape_cast %11 : vector<256xf32> to vector<1x256xf32>
    %cst_6 = arith.constant 8.000000e+00 : f32
    %13 = vector.broadcast %cst_6 : f32 to vector<1x256xf32>
    %14 = arith.divf %12, %13 : vector<1x256xf32>
    %15 = vector.broadcast %7 : vector<1x256xf32> to vector<8x256xf32>
    %16 = arith.subf %3, %15 : vector<8x256xf32>
    %cst_7 = arith.constant 9.99999974E-6 : f32
    %17 = vector.broadcast %cst_7 : f32 to vector<1x256xf32>
    %18 = arith.addf %14, %17 : vector<1x256xf32>
    %19 = math.rsqrt %18 : vector<1x256xf32>
    %20 = vector.broadcast %19 : vector<1x256xf32> to vector<8x256xf32>
    %21 = arith.mulf %16, %20 : vector<8x256xf32>
    %cst_8 = arith.constant 0.000000e+00 : f32
    %22 = vector.broadcast %cst_8 : f32 to vector<8x256xf32>
    %23 = arith.maximumf %21, %22 : vector<8x256xf32>
    %c0_9 = arith.constant 0 : index
    %c0_10 = arith.constant 0 : index
    %24 = vector.load %arg2[%c0_9, %c0_10] : memref<256x256xbf16, #tpu.memory_space<vmem>>, vector<256x256xbf16>
    %25 = arith.extf %24 : vector<256x256xbf16> to vector<256x256xf32>
    %cst_11 = arith.constant dense<0.000000e+00> : vector<8x256xf32>
    %26 = tpu.matmul %23, %25, %cst_11 {dimension_numbers = #tpu.dot_dimension_numbers<[1], [0], [0], [1], [0, 0, 1, 1], [], []>} : vector<8x256xf32>, vector<256x256xf32>, vector<8x256xf32> -> vector<8x256xf32>
    %cst_12 = arith.constant dense<0.000000e+00> : vector<256xf32>
    %27 = vector.multi_reduction <add>, %26, %cst_12 [0] : vector<8x256xf32> to vector<256xf32>
    %28 = vector.shape_cast %27 : vector<256xf32> to vector<1x256xf32>
    %cst_13 = arith.constant 8.000000e+00 : f32
    %29 = vector.broadcast %cst_13 : f32 to vector<1x256xf32>
    %30 = arith.divf %28, %29 : vector<1x256xf32>
    %31 = vector.broadcast %30 : vector<1x256xf32> to vector<8x256xf32>
    %32 = arith.subf %26, %31 : vector<8x256xf32>
    %33 = arith.mulf %32, %32 : vector<8x256xf32>
    %cst_14 = arith.constant dense<0.000000e+00> : vector<256xf32>
    %34 = vector.multi_reduction <add>, %33, %cst_14 [0] : vector<8x256xf32> to vector<256xf32>
    %35 = vector.shape_cast %34 : vector<256xf32> to vector<1x256xf32>
    %cst_15 = arith.constant 8.000000e+00 : f32
    %36 = vector.broadcast %cst_15 : f32 to vector<1x256xf32>
    %37 = arith.divf %35, %36 : vector<1x256xf32>
    %38 = vector.broadcast %30 : vector<1x256xf32> to vector<8x256xf32>
    %39 = arith.subf %26, %38 : vector<8x256xf32>
    %cst_16 = arith.constant 9.99999974E-6 : f32
    %40 = vector.broadcast %cst_16 : f32 to vector<1x256xf32>
    %41 = arith.addf %37, %40 : vector<1x256xf32>
    %42 = math.rsqrt %41 : vector<1x256xf32>
    %43 = vector.broadcast %42 : vector<1x256xf32> to vector<8x256xf32>
    %44 = arith.mulf %39, %43 : vector<8x256xf32>
    %cst_17 = arith.constant 0.000000e+00 : f32
    %45 = vector.broadcast %cst_17 : f32 to vector<8x256xf32>
    %46 = arith.maximumf %44, %45 : vector<8x256xf32>
    %c0_18 = arith.constant 0 : index
    %c0_19 = arith.constant 0 : index
    %47 = vector.load %arg3[%c0_18, %c0_19] : memref<256x256xbf16, #tpu.memory_space<vmem>>, vector<256x256xbf16>
    %48 = arith.extf %47 : vector<256x256xbf16> to vector<256x256xf32>
    %cst_20 = arith.constant dense<0.000000e+00> : vector<8x256xf32>
    %49 = tpu.matmul %46, %48, %cst_20 {dimension_numbers = #tpu.dot_dimension_numbers<[1], [0], [0], [1], [0, 0, 1, 1], [], []>} : vector<8x256xf32>, vector<256x256xf32>, vector<8x256xf32> -> vector<8x256xf32>
    %cst_21 = arith.constant dense<0.000000e+00> : vector<256xf32>
    %50 = vector.multi_reduction <add>, %49, %cst_21 [0] : vector<8x256xf32> to vector<256xf32>
    %51 = vector.shape_cast %50 : vector<256xf32> to vector<1x256xf32>
    %cst_22 = arith.constant 8.000000e+00 : f32
    %52 = vector.broadcast %cst_22 : f32 to vector<1x256xf32>
    %53 = arith.divf %51, %52 : vector<1x256xf32>
    %54 = vector.broadcast %53 : vector<1x256xf32> to vector<8x256xf32>
    %55 = arith.subf %49, %54 : vector<8x256xf32>
    %56 = arith.mulf %55, %55 : vector<8x256xf32>
    %cst_23 = arith.constant dense<0.000000e+00> : vector<256xf32>
    %57 = vector.multi_reduction <add>, %56, %cst_23 [0] : vector<8x256xf32> to vector<256xf32>
    %58 = vector.shape_cast %57 : vector<256xf32> to vector<1x256xf32>
    %cst_24 = arith.constant 8.000000e+00 : f32
    %59 = vector.broadcast %cst_24 : f32 to vector<1x256xf32>
    %60 = arith.divf %58, %59 : vector<1x256xf32>
    %61 = vector.broadcast %53 : vector<1x256xf32> to vector<8x256xf32>
    %62 = arith.subf %49, %61 : vector<8x256xf32>
    %cst_25 = arith.constant 9.99999974E-6 : f32
    %63 = vector.broadcast %cst_25 : f32 to vector<1x256xf32>
    %64 = arith.addf %60, %63 : vector<1x256xf32>
    %65 = math.rsqrt %64 : vector<1x256xf32>
    %66 = vector.broadcast %65 : vector<1x256xf32> to vector<8x256xf32>
    %67 = arith.mulf %62, %66 : vector<8x256xf32>
    %cst_26 = arith.constant 0.000000e+00 : f32
    %68 = vector.broadcast %cst_26 : f32 to vector<8x256xf32>
    %69 = arith.maximumf %67, %68 : vector<8x256xf32>
    %c0_27 = arith.constant 0 : index
    %c0_28 = arith.constant 0 : index
    %70 = vector.load %arg4[%c0_27, %c0_28] : memref<256x128xbf16, #tpu.memory_space<vmem>>, vector<256x128xbf16>
    %71 = arith.extf %70 : vector<256x128xbf16> to vector<256x128xf32>
    %cst_29 = arith.constant dense<0.000000e+00> : vector<8x128xf32>
    %72 = tpu.matmul %69, %71, %cst_29 {dimension_numbers = #tpu.dot_dimension_numbers<[1], [0], [0], [1], [0, 0, 1, 1], [], []>} : vector<8x256xf32>, vector<256x128xf32>, vector<8x128xf32> -> vector<8x128xf32>
    %c0_30 = arith.constant 0 : index
    %c0_31 = arith.constant 0 : index
    %73 = vector.load %arg5[%c0_30, %c0_31] : memref<8x128xf32, #tpu.memory_space<vmem>>, vector<8x128xf32>
    tpu.vector_store %arg5[%c0_30, %c0_31], %72 {strides = array<i32>} : memref<8x128xf32, #tpu.memory_space<vmem>>, vector<8x128xf32>,
    return
  }
}

</mosaic_0001>

<bundles_post_ra>
// kernel: tpu_custom_call.1
= control target key start
LH: loop header
LB: loop body
LE: loop exit
PB: predicated region body
PF: predicated region fallthrough
CT: control target
= control target key end

     0   :  { %10 = vsyncpa [#allocation3], 0  ;;  %s2364_s0 = inlined_call_operand.hbm [shape: f32[8,1024], index: 0, kind: input, shape index: {}]   ;;  %s2365_s1 = inlined_call_operand.hbm [shape: bf16[1024,256], index: 1, kind: input, shape index: {}]   ;;  %s2366_s2 = inlined_call_operand.hbm [shape: bf16[256,256], index: 2, kind: input, shape index: {}]   ;;  %s2367_s3 = inlined_call_operand.hbm [shape: bf16[256,256], index: 3, kind: input, shape index: {}]   ;;  %s2368_s4 = inlined_call_operand.hbm [shape: bf16[256,128], index: 4, kind: input, shape index: {}]   ;;  %s2369_s5 = inlined_call_operand.hbm [shape: f32[8,128], index: 5, kind: output, shape index: {}]  }
   0x1   :  { %11 = vsyncpa [#allocation6], 0 }
   0x2   :  { %12 = vsyncpa [#allocation9], 0  ;;  %s29_s20 = sshll.u32 %s2365_s1, 4  ;;  %s30_s20 = int_to_ptr.hbm [resolvable:$true] %s29_s20 }
   0x3   :  { %13 = vsyncpa [#allocation4], 0  ;;  %s1722_s21 = smov [#allocation5]   ;;  %s55_s25 = sshll.u32 %s2367_s3, 4  ;;  %s56_s25 = int_to_ptr.hbm [resolvable:$true] %s55_s25 }
   0x4   :  { %s31_s22 = sshll.u32 %s1722_s21, 4  ;;  %s1723_s26 = smov 128   ;;  %s32_s22 = int_to_ptr.vmem [resolvable:$true] %s31_s22 }
   0x5   :  { %s1724_s27 = smov 8   ;;  %s1725_s28 = smov [#allocation8]  }
   0x6   :  { %37 = dma.hbm_to_vmem [thread:$0]  %s30_s20, 16384, %s32_s22, [#allocation6], %s1723_s26, %s1723_s26, %s1724_s27  }
   0x7   :  { %s57_s29 = sshll.u32 %s1725_s28, 4  ;;  %s19_s7 = sshll.u32 %s2364_s0, 4  ;;  %s58_s29 = int_to_ptr.vmem [resolvable:$true] %s57_s29  ;;  %s20_s7 = int_to_ptr.hbm [resolvable:$true] %s19_s7 }
   0x8   :  { %63 = dma.hbm_to_vmem [thread:$0]  %s56_s25, 4096, %s58_s29, [#allocation9], %s1723_s26, %s1723_s26, %s1724_s27  }
   0x9   :  { %s42_s9 = sshll.u32 %s2366_s2, 4  ;;  %s1726_s10 = smov [#allocation2]   ;;  %s43_s9 = int_to_ptr.hbm [resolvable:$true] %s42_s9 }
   0xa   :  { %s21_s11 = sshll.u32 %s1726_s10, 4  ;;  %s1727_s3 = smov [#allocation7]   ;;  %s22_s11 = int_to_ptr.vmem [resolvable:$true] %s21_s11 }
   0xb   :  { %24 = dma.hbm_to_vmem [thread:$0]  %s20_s7, 1024, %s22_s11, [#allocation3]  }
   0xc   :  { %s44_s12 = sshll.u32 %s1727_s3, 4  ;;  %s68_s15 = sshll.u32 %s2368_s4, 4  ;;  %s45_s12 = int_to_ptr.vmem [resolvable:$true] %s44_s12  ;;  %s69_s15 = int_to_ptr.hbm [resolvable:$true] %s68_s15 }
   0xd   :  { %50 = dma.hbm_to_vmem [thread:$0]  %s43_s9, 4096, %s45_s12, [#allocation6], %s1723_s26, %s1723_s26, %s1724_s27  }
   0xe   :  { %s1728_s0 = smov [#allocation10]   ;;  %s1729_s17 = smov 64  }
   0xf   :  { %s70_s16 = sshll.u32 %s1728_s0, 4  ;;  %s1730_s18 = smov 4   ;;  %s71_s16 = int_to_ptr.vmem [resolvable:$true] %s70_s16 }
  0x10   :  { %76 = dma.hbm_to_vmem [thread:$0]  %s69_s15, 2048, %s71_s16, [#allocation9], %s1729_s17, %s1729_s17, %s1730_s18  }
  0x11   :  { %1714 = dma.done.wait [#allocation3], 1024  }
  0x12   :  { %1715 = vsyncadd [#allocation3], 4294966272 }
  0x13   :  { %1716 = dma.done.wait [#allocation6], 20480  }
  0x14   :  { %1717 = vsyncadd [#allocation6], 4294946816 }
  0x15   :  { %1718 = dma.done.wait [#allocation9], 6144  }
  0x16   :  { %1719 = vsyncadd [#allocation9], 4294961152  ;;  %v1778_v0 = vld [vmem:[#allocation5 + $0x78] sm:$0xff]  ;;  %v1782_v2 = vld [vmem:[#allocation5 + $0x70] sm:$0xff]  ;;  %s1732_s2 = smov [#allocation11]   ;;  %s1454_s21 = sshll.u32 %s2369_s5, 4  ;;  %s1455_s21 = int_to_ptr.hbm [resolvable:$true] %s1454_s21 }
  0x17   :  { %v1780_v1 = vld [vmem:[#allocation5 + $0x178] sm:$0xff]  ;;  %v263_v3 = vunpack.c.l.bf16 %v1778_v0  ;;  %v1788_v6 = vld [vmem:[#allocation5 + $0x170] sm:$0xff]  ;;  %v261_v8 = vunpack.c.l.bf16 %v1782_v2  ;;  %v1794_v10 = vld [vmem:[#allocation5 + $0x68] sm:$0xff]  ;;  %s1452_s4 = sshll.u32 %s1732_s2, 4  ;;  %s1453_s4 = int_to_ptr.vmem [resolvable:$true] %s1452_s4 }
  0x18   :  { %v327_v4 = vunpack.c.l.bf16 %v1780_v1  ;;  %v1786_v5 = vld [vmem:[#allocation5 + $0xf8] sm:$0xff]  ;;  %v1796_v11 = vld [vmem:[#allocation5 + $0xf0] sm:$0xff]  ;;  %v1798_v12 = vld [vmem:[#allocation5 + $0x168] sm:$0xff]  ;;  %v325_v13 = vunpack.c.l.bf16 %v1788_v6  ;;  %v259_v18 = vunpack.c.l.bf16 %v1794_v10 }
  0x19   :  { %v1790_v7 = vld [vmem:[#allocation5 + $0x1f8] sm:$0xff]  ;;  %v295_v9 = vunpack.c.l.bf16 %v1786_v5  ;;  %489 = vmatpush.msra.mxu0 %v263_v3  ;;  %v1802_v15 = vld [vmem:[#allocation5 + $0x1f0] sm:$0xff]  ;;  %v1804_v16 = vld [vmem:[#allocation5 + $0x60] sm:$0xff]  ;;  %v293_v19 = vunpack.c.l.bf16 %v1796_v11  ;;  %v323_v22 = vunpack.c.l.bf16 %v1798_v12 }
  0x1a   :  { %529 = vmatpush.msra.mxu2 %v327_v4  ;;  %v359_v14 = vunpack.c.l.bf16 %v1790_v7  ;;  %v1806_v17 = vld [vmem:[#allocation5 + $0xe8] sm:$0xff]  ;;  %v1810_v20 = vld [vmem:[#allocation5 + $0x160] sm:$0xff]  ;;  %v357_v23 = vunpack.c.l.bf16 %v1802_v15  ;;  %v1816_v24 = vld [vmem:[#allocation5 + $0x58] sm:$0xff]  ;;  %v257_v26 = vunpack.c.l.bf16 %v1804_v16 }
  0x1b   :  { %509 = vmatpush.msra.mxu1 %v295_v9  ;;  %v1812_v21 = vld [vmem:[#allocation5 + $0x1e8] sm:$0xff]  ;;  %490 = vmatpush.msra.mxu0 %v261_v8  ;;  %v1818_v25 = vld [vmem:[#allocation5 + $0xe0] sm:$0xff]  ;;  %v291_v27 = vunpack.c.l.bf16 %v1806_v17  ;;  %v1822_v28 = vld [vmem:[#allocation5 + $0x158] sm:$0xff]  ;;  %v321_v30 = vunpack.c.l.bf16 %v1810_v20  ;;  %v255_v34 = vunpack.c.l.bf16 %v1816_v24 }
  0x1c   :  { %530 = vmatpush.msra.mxu2 %v325_v13  ;;  %549 = vmatpush.msra.mxu3 %v359_v14  ;;  %v1824_v29 = vld [vmem:[#allocation5 + $0x1e0] sm:$0xff]  ;;  %v355_v31 = vunpack.c.l.bf16 %v1812_v21  ;;  %v1828_v32 = vld [vmem:[#allocation5 + $0x50] sm:$0xff]  ;;  %v1830_v33 = vld [vmem:[#allocation5 + $0xd8] sm:$0xff]  ;;  %v289_v35 = vunpack.c.l.bf16 %v1818_v25  ;;  %v319_v38 = vunpack.c.l.bf16 %v1822_v28 }
  0x1d   :  { %510 = vmatpush.msra.mxu1 %v293_v19  ;;  %491 = vmatpush.msra.mxu0 %v259_v18  ;;  %v1834_v36 = vld [vmem:[#allocation5 + $0x150] sm:$0xff]  ;;  %v1836_v37 = vld [vmem:[#allocation5 + $0x1d8] sm:$0xff]  ;;  %v353_v39 = vunpack.c.l.bf16 %v1824_v29  ;;  %v1840_v40 = vld [vmem:[#allocation5 + $0x48] sm:$0xff]  ;;  %v253_v42 = vunpack.c.l.bf16 %v1828_v32  ;;  %v287_v43 = vunpack.c.l.bf16 %v1830_v33 }
  0x1e   :  { %531 = vmatpush.msra.mxu2 %v323_v22  ;;  %550 = vmatpush.msra.mxu3 %v357_v23  ;;  %v1842_v41 = vld [vmem:[#allocation5 + $0xd0] sm:$0xff]  ;;  %v1846_v44 = vld [vmem:[#allocation5 + $0x148] sm:$0xff]  ;;  %v317_v46 = vunpack.c.l.bf16 %v1834_v36  ;;  %v351_v47 = vunpack.c.l.bf16 %v1836_v37  ;;  %v1852_v48 = vld [vmem:[#allocation5 + $0x40] sm:$0xff]  ;;  %v251_v50 = vunpack.c.l.bf16 %v1840_v40 }
  0x1f   :  { %511 = vmatpush.msra.mxu1 %v291_v27  ;;  %492 = vmatpush.msra.mxu0 %v257_v26  ;;  %v1848_v45 = vld [vmem:[#allocation5 + $0x1d0] sm:$0xff]  ;;  %v1854_v49 = vld [vmem:[#allocation5 + $0xc8] sm:$0xff]  ;;  %v285_v51 = vunpack.c.l.bf16 %v1842_v41  ;;  %v1858_v52 = vld [vmem:[#allocation5 + $0x140] sm:$0xff]  ;;  %v315_v54 = vunpack.c.l.bf16 %v1846_v44  ;;  %v249_v58 = vunpack.c.l.bf16 %v1852_v48 }
  0x20   :  { %532 = vmatpush.msra.mxu2 %v321_v30  ;;  %551 = vmatpush.msra.mxu3 %v355_v31  ;;  %v1860_v53 = vld [vmem:[#allocation5 + $0x1c8] sm:$0xff]  ;;  %v349_v55 = vunpack.c.l.bf16 %v1848_v45  ;;  %v1864_v56 = vld [vmem:[#allocation5 + $0x38] sm:$0xff]  ;;  %v1866_v57 = vld [vmem:[#allocation5 + $0xc0] sm:$0xff]  ;;  %v283_v59 = vunpack.c.l.bf16 %v1854_v49  ;;  %v313_v62 = vunpack.c.l.bf16 %v1858_v52 }
  0x21   :  { %512 = vmatpush.msra.mxu1 %v289_v35  ;;  %493 = vmatpush.msra.mxu0 %v255_v34  ;;  %v1870_v60 = vld [vmem:[#allocation5 + $0x138] sm:$0xff]  ;;  %v1872_v61 = vld [vmem:[#allocation5 + $0x1c0] sm:$0xff]  ;;  %v347_v63 = vunpack.c.l.bf16 %v1860_v53  ;;  %v1876_v3 = vld [vmem:[#allocation5 + $0x30] sm:$0xff]  ;;  %v247_v8 = vunpack.c.l.bf16 %v1864_v56  ;;  %v281_v9 = vunpack.c.l.bf16 %v1866_v57 }
  0x22   :  { %533 = vmatpush.msra.mxu2 %v319_v38  ;;  %552 = vmatpush.msra.mxu3 %v353_v39  ;;  %v1878_v4 = vld [vmem:[#allocation5 + $0xb8] sm:$0xff]  ;;  %v1882_v13 = vld [vmem:[#allocation5 + $0x130] sm:$0xff]  ;;  %v311_v18 = vunpack.c.l.bf16 %v1870_v60  ;;  %v345_v19 = vunpack.c.l.bf16 %v1872_v61  ;;  %v1888_v22 = vld [vmem:[#allocation5 + $0x28] sm:$0xff]  ;;  %v245_v26 = vunpack.c.l.bf16 %v1876_v3 }
  0x23   :  { %513 = vmatpush.msra.mxu1 %v287_v43  ;;  %494 = vmatpush.msra.mxu0 %v253_v42  ;;  %v1884_v14 = vld [vmem:[#allocation5 + $0x1b8] sm:$0xff]  ;;  %v1890_v23 = vld [vmem:[#allocation5 + $0xb0] sm:$0xff]  ;;  %v279_v27 = vunpack.c.l.bf16 %v1878_v4  ;;  %v1894_v30 = vld [vmem:[#allocation5 + $0x128] sm:$0xff]  ;;  %v309_v34 = vunpack.c.l.bf16 %v1882_v13  ;;  %v243_v42 = vunpack.c.l.bf16 %v1888_v22 }
  0x24   :  { %534 = vmatpush.msra.mxu2 %v317_v46  ;;  %553 = vmatpush.msra.mxu3 %v351_v47  ;;  %v1896_v31 = vld [vmem:[#allocation5 + $0x1b0] sm:$0xff]  ;;  %v343_v35 = vunpack.c.l.bf16 %v1884_v14  ;;  %v1900_v38 = vld [vmem:[#allocation5 + $0x20] sm:$0xff]  ;;  %v1902_v39 = vld [vmem:[#allocation5 + $0xa8] sm:$0xff]  ;;  %v277_v43 = vunpack.c.l.bf16 %v1890_v23 }
  0x25   :  { %514 = vmatpush.msra.mxu1 %v285_v51  ;;  %495 = vmatpush.msra.mxu0 %v251_v50  ;;  %2452 = vst [vmem:[#allocation16_spill] sm:$0xff] %v1902_v39  ;;  %v1906_v46 = vld [vmem:[#allocation5 + $0x120] sm:$0xff]  ;;  %v1908_v47 = vld [vmem:[#allocation5 + $0x1a8] sm:$0xff]  ;;  %v307_v50 = vunpack.c.l.bf16 %v1894_v30  ;;  %v341_v51 = vunpack.c.l.bf16 %v1896_v31 }
  0x26   :  { %535 = vmatpush.msra.mxu2 %v315_v54  ;;  %554 = vmatpush.msra.mxu3 %v349_v55  ;;  %2453 = vst [vmem:[#allocation17_spill] sm:$0xff] %v1906_v46  ;;  %v1912_v54 = vld [vmem:[#allocation5 + $0x18] sm:$0xff]  ;;  %v1914_v55 = vld [vmem:[#allocation5 + $0xa0] sm:$0xff] }
  0x27   :  { %515 = vmatpush.msra.mxu1 %v283_v59  ;;  %496 = vmatpush.msra.mxu0 %v249_v58  ;;  %2454 = vst [vmem:[#allocation18_spill] sm:$0xff] %v1908_v47  ;;  %v241_v58 = vunpack.c.l.bf16 %v1900_v38  ;;  %v275_v59 = vunpack.c.l.bf16 %v1902_v39  ;;  %v2168_v39 = vld [vmem:[#allocation5 + $0x380] sm:$0xff] }
  0x28   :  { %536 = vmatpush.msra.mxu2 %v313_v62  ;;  %555 = vmatpush.msra.mxu3 %v347_v63  ;;  %2455 = vst [vmem:[#allocation19_spill] sm:$0xff] %v1912_v54  ;;  %v1918_v62 = vld [vmem:[#allocation5 + $0x118] sm:$0xff]  ;;  %v1920_v63 = vld [vmem:[#allocation5 + $0x1a0] sm:$0xff] }
  0x29   :  { %516 = vmatpush.msra.mxu1 %v281_v9  ;;  %497 = vmatpush.msra.mxu0 %v247_v8  ;;  %2456 = vst [vmem:[#allocation20_spill] sm:$0xff] %v1914_v55  ;;  %v305_v8 = vunpack.c.l.bf16 %v1906_v46  ;;  %v339_v9 = vunpack.c.l.bf16 %v1908_v47  ;;  %v1938_v47 = vld [vmem:[#allocation5 + $0x90] sm:$0xff]  ;;  %v2132_v46 = vld [vmem:[#allocation5 + $0x208] sm:$0xff] }
  0x2a   :  { %537 = vmatpush.msra.mxu2 %v311_v18  ;;  %556 = vmatpush.msra.mxu3 %v345_v19  ;;  %2457 = vst [vmem:[#allocation21_spill] sm:$0xff] %v1918_v62  ;;  %v1924_v18 = vld [vmem:[#allocation5 + $0x10] sm:$0xff]  ;;  %v1926_v19 = vld [vmem:[#allocation5 + $0x98] sm:$0xff] }
  0x2b   :  { %517 = vmatpush.msra.mxu1 %v279_v27  ;;  %498 = vmatpush.msra.mxu0 %v245_v26  ;;  %2458 = vst [vmem:[#allocation22_spill] sm:$0xff] %v1920_v63  ;;  %v239_v26 = vunpack.c.l.bf16 %v1912_v54  ;;  %v273_v27 = vunpack.c.l.bf16 %v1914_v55  ;;  %v1942_v55 = vld [vmem:[#allocation5 + $0x108] sm:$0xff]  ;;  %v1944_v54 = vld [vmem:[#allocation5 + $0x190] sm:$0xff] }
  0x2c   :  { %538 = vmatpush.msra.mxu2 %v309_v34  ;;  %557 = vmatpush.msra.mxu3 %v343_v35  ;;  %2459 = vst [vmem:[#allocation23_spill] sm:$0xff] %v1924_v18  ;;  %v1930_v34 = vld [vmem:[#allocation5 + $0x110] sm:$0xff]  ;;  %v1932_v35 = vld [vmem:[#allocation5 + $0x198] sm:$0xff] }
  0x2d   :  { %518 = vmatpush.msra.mxu1 %v277_v43  ;;  %499 = vmatpush.msra.mxu0 %v243_v42  ;;  %2460 = vst [vmem:[#allocation24_spill] sm:$0xff] %v1926_v19  ;;  %v303_v42 = vunpack.c.l.bf16 %v1918_v62  ;;  %v337_v43 = vunpack.c.l.bf16 %v1920_v63  ;;  %v1948_v63 = vld [vmem:[#allocation5] sm:$0xff]  ;;  %v1950_v62 = vld [vmem:[#allocation5 + $0x88] sm:$0xff] }
  0x2e   :  { %539 = vmatpush.msra.mxu2 %v307_v50  ;;  %558 = vmatpush.msra.mxu3 %v341_v51  ;;  %2461 = vst [vmem:[#allocation25_spill] sm:$0xff] %v1930_v34  ;;  %v1936_v50 = vld [vmem:[#allocation5 + $0x8] sm:$0xff]  ;;  %v237_v51 = vunpack.c.l.bf16 %v1924_v18 }
  0x2f   :  { %519 = vmatpush.msra.mxu1 %v275_v59  ;;  %2462 = vst [vmem:[#allocation26_spill] sm:$0xff] %v1932_v35  ;;  %500 = vmatpush.msra.mxu0 %v241_v58  ;;  %v271_v59 = vunpack.c.l.bf16 %v1926_v19  ;;  %v301_v58 = vunpack.c.l.bf16 %v1930_v34  ;;  %v1954_v19 = vld [vmem:[#allocation5 + $0x100] sm:$0xff]  ;;  %v1956_v18 = vld [vmem:[#allocation5 + $0x188] sm:$0xff]  ;;  %v1962_v34 = vld [vmem:[#allocation5 + $0x378] sm:$0xff] }
  0x30   :  { %540 = vmatpush.msra.mxu2 %v305_v8  ;;  %2463 = vst [vmem:[#allocation27_spill] sm:$0xff] %v1936_v50  ;;  %559 = vmatpush.msra.mxu3 %v339_v9  ;;  %v335_v8 = vunpack.c.l.bf16 %v1932_v35  ;;  %v235_v9 = vunpack.c.l.bf16 %v1936_v50  ;;  %v1960_v35 = vld [vmem:[#allocation5 + $0x278] sm:$0xff]  ;;  %v1968_v50 = vld [vmem:[#allocation5 + $0x180] sm:$0xff] }
  0x31   :  { %2464 = vst [vmem:[#allocation28_spill] sm:$0xff] %v1938_v47  ;;  %520 = vmatpush.msra.mxu1 %v273_v27  ;;  %501 = vmatpush.msra.mxu0 %v239_v26  ;;  %v269_v27 = vunpack.c.l.bf16 %v1938_v47  ;;  %v299_v26 = vunpack.c.l.bf16 %v1942_v55  ;;  %v1966_v47 = vld [vmem:[#allocation5 + $0x80] sm:$0xff] }
  0x32   :  { %2465 = vst [vmem:[#allocation29_spill] sm:$0xff] %v1942_v55  ;;  %541 = vmatpush.msra.mxu2 %v303_v42  ;;  %560 = vmatpush.msra.mxu3 %v337_v43  ;;  %v333_v42 = vunpack.c.l.bf16 %v1944_v54  ;;  %v233_v43 = vunpack.c.l.bf16 %v1948_v63  ;;  %v1974_v55 = vld [vmem:[#allocation5 + $0x2f8] sm:$0xff] }
  0x33   :  { %2466 = vst [vmem:[#allocation30_spill] sm:$0xff] %v1944_v54  ;;  %521 = vmatpush.msra.mxu1 %v271_v59  ;;  %502 = vmatpush.msra.mxu0 %v237_v51  ;;  %v267_v59 = vunpack.c.l.bf16 %v1950_v62  ;;  %v297_v51 = vunpack.c.l.bf16 %v1954_v19  ;;  %v1972_v54 = vld [vmem:[#allocation5 + $0x270] sm:$0xff] }
  0x34   :  { %2467 = vst [vmem:[#allocation31_spill] sm:$0xff] %v1948_v63  ;;  %542 = vmatpush.msra.mxu2 %v301_v58  ;;  %561 = vmatpush.msra.mxu3 %v335_v8  ;;  %v331_v58 = vunpack.c.l.bf16 %v1956_v18  ;;  %v391_v8 = vunpack.c.l.bf16 %v1960_v35  ;;  %v1980_v63 = vld [vmem:[#allocation5 + $0x3f8] sm:$0xff] }
  0x35   :  { %2468 = vst [vmem:[#allocation32_spill] sm:$0xff] %v1950_v62  ;;  %522 = vmatpush.msra.mxu1 %v269_v27  ;;  %503 = vmatpush.msra.mxu0 %v235_v9  ;;  %v455_v27 = vunpack.c.l.bf16 %v1962_v34  ;;  %v1978_v62 = vld [vmem:[#allocation5 + $0x370] sm:$0xff]  ;;  %v265_v9 = vunpack.c.l.bf16 %v1966_v47 }
  0x36   :  { %2469 = vst [vmem:[#allocation33_spill] sm:$0xff] %v1954_v19  ;;  %543 = vmatpush.msra.mxu2 %v299_v26  ;;  %562 = vmatpush.msra.mxu3 %v333_v42  ;;  %v329_v26 = vunpack.c.l.bf16 %v1968_v50  ;;  %v1986_v19 = vld [vmem:[#allocation5 + $0x2f0] sm:$0xff]  ;;  %v389_v42 = vunpack.c.l.bf16 %v1972_v54 }
  0x37   :  { %2470 = vst [vmem:[#allocation34_spill] sm:$0xff] %v1956_v18  ;;  %523 = vmatpush.msra.mxu1 %v267_v59  ;;  %504 = vmatpush.msra.mxu0 %v233_v43  ;;  %v1984_v18 = vld [vmem:[#allocation5 + $0x268] sm:$0xff]  ;;  %v423_v59 = vunpack.c.l.bf16 %v1974_v55  ;;  %v453_v43 = vunpack.c.l.bf16 %v1978_v62 }
  0x38   :  { %2471 = vst [vmem:[#allocation35_spill] sm:$0xff] %v1960_v35  ;;  %544 = vmatpush.msra.mxu2 %v297_v51  ;;  %563 = vmatpush.msra.mxu3 %v331_v58  ;;  %v1992_v35 = vld [vmem:[#allocation5 + $0x3f0] sm:$0xff]  ;;  %v487_v51 = vunpack.c.l.bf16 %v1980_v63  ;;  %v387_v58 = vunpack.c.l.bf16 %v1984_v18 }
  0x39   :  { %2472 = vst [vmem:[#allocation36_spill] sm:$0xff] %v1962_v34  ;;  %569 = vmatpush.msrb.mxu0 %v391_v8  ;;  %v1990_v34 = vld [vmem:[#allocation5 + $0x368] sm:$0xff]  ;;  %524 = vmatpush.msra.mxu1 %v265_v9  ;;  %v421_v8 = vunpack.c.l.bf16 %v1986_v19  ;;  %v485_v9 = vunpack.c.l.bf16 %v1992_v35 }
  0x3a   :  { %2473 = vst [vmem:[#allocation37_spill] sm:$0xff] %v1966_v47  ;;  %609 = vmatpush.msrb.mxu2 %v455_v27  ;;  %v1998_v47 = vld [vmem:[#allocation5 + $0x2e8] sm:$0xff]  ;;  %564 = vmatpush.msra.mxu3 %v329_v26  ;;  %v451_v27 = vunpack.c.l.bf16 %v1990_v34 }
  0x3b   :  { %2474 = vst [vmem:[#allocation38_spill] sm:$0xff] %v1968_v50  ;;  %v1996_v50 = vld [vmem:[#allocation5 + $0x260] sm:$0xff]  ;;  %570 = vmatpush.msrb.mxu0 %v389_v42  ;;  %589 = vmatpush.msrb.mxu1 %v423_v59  ;;  %v419_v42 = vunpack.c.l.bf16 %v1998_v47 }
  0x3c   :  { %2475 = vst [vmem:[#allocation39_spill] sm:$0xff] %v1972_v54  ;;  %v2004_v54 = vld [vmem:[#allocation5 + $0x3e8] sm:$0xff]  ;;  %610 = vmatpush.msrb.mxu2 %v453_v43  ;;  %629 = vmatpush.msrb.mxu3 %v487_v51  ;;  %v385_v26 = vunpack.c.l.bf16 %v1996_v50 }
  0x3d   :  { %2476 = vst [vmem:[#allocation40_spill] sm:$0xff] %v1974_v55  ;;  %v2002_v55 = vld [vmem:[#allocation5 + $0x360] sm:$0xff]  ;;  %571 = vmatpush.msrb.mxu0 %v387_v58  ;;  %590 = vmatpush.msrb.mxu1 %v421_v8  ;;  %v483_v43 = vunpack.c.l.bf16 %v2004_v54 }
  0x3e   :  { %2477 = vst [vmem:[#allocation41_spill] sm:$0xff] %v1978_v62  ;;  %v2010_v62 = vld [vmem:[#allocation5 + $0x2e0] sm:$0xff]  ;;  %611 = vmatpush.msrb.mxu2 %v451_v27  ;;  %v449_v59 = vunpack.c.l.bf16 %v2002_v55  ;;  %630 = vmatpush.msrb.mxu3 %v485_v9 }
  0x3f   :  { %2478 = vst [vmem:[#allocation42_spill] sm:$0xff] %v1980_v63  ;;  %v2008_v63 = vld [vmem:[#allocation5 + $0x258] sm:$0xff]  ;;  %572 = vmatpush.msrb.mxu0 %v385_v26  ;;  %v417_v58 = vunpack.c.l.bf16 %v2010_v62  ;;  %591 = vmatpush.msrb.mxu1 %v419_v42 }
  0x40   :  { %2479 = vst [vmem:[#allocation43_spill] sm:$0xff] %v1984_v18  ;;  %v2016_v18 = vld [vmem:[#allocation5 + $0x3e0] sm:$0xff]  ;;  %v383_v51 = vunpack.c.l.bf16 %v2008_v63  ;;  %612 = vmatpush.msrb.mxu2 %v449_v59  ;;  %631 = vmatpush.msrb.mxu3 %v483_v43 }
  0x41   :  { %2480 = vst [vmem:[#allocation44_spill] sm:$0xff] %v1986_v19  ;;  %v2014_v19 = vld [vmem:[#allocation5 + $0x358] sm:$0xff]  ;;  %v481_v27 = vunpack.c.l.bf16 %v2016_v18  ;;  %592 = vmatpush.msrb.mxu1 %v417_v58 }
  0x42   :  { %2481 = vst [vmem:[#allocation45_spill] sm:$0xff] %v1990_v34  ;;  %v2022_v34 = vld [vmem:[#allocation5 + $0x2d8] sm:$0xff]  ;;  %v447_v8 = vunpack.c.l.bf16 %v2014_v19  ;;  %573 = vmatpush.msrb.mxu0 %v383_v51 }
  0x43   :  { %2482 = vst [vmem:[#allocation46_spill] sm:$0xff] %v1992_v35  ;;  %v2020_v35 = vld [vmem:[#allocation5 + $0x250] sm:$0xff]  ;;  %v415_v26 = vunpack.c.l.bf16 %v2022_v34  ;;  %632 = vmatpush.msrb.mxu3 %v481_v27 }
  0x44   :  { %2483 = vst [vmem:[#allocation47_spill] sm:$0xff] %v1996_v50  ;;  %v2028_v50 = vld [vmem:[#allocation5 + $0x3d8] sm:$0xff]  ;;  %v381_v9 = vunpack.c.l.bf16 %v2020_v35  ;;  %613 = vmatpush.msrb.mxu2 %v447_v8 }
  0x45   :  { %2484 = vst [vmem:[#allocation48_spill] sm:$0xff] %v1998_v47  ;;  %v2026_v47 = vld [vmem:[#allocation5 + $0x350] sm:$0xff]  ;;  %v479_v59 = vunpack.c.l.bf16 %v2028_v50  ;;  %593 = vmatpush.msrb.mxu1 %v415_v26 }
  0x46   :  { %2485 = vst [vmem:[#allocation49_spill] sm:$0xff] %v2002_v55  ;;  %v2034_v55 = vld [vmem:[#allocation5 + $0x2d0] sm:$0xff]  ;;  %v445_v42 = vunpack.c.l.bf16 %v2026_v47  ;;  %574 = vmatpush.msrb.mxu0 %v381_v9 }
  0x47   :  { %2486 = vst [vmem:[#allocation50_spill] sm:$0xff] %v2004_v54  ;;  %v2032_v54 = vld [vmem:[#allocation5 + $0x248] sm:$0xff]  ;;  %v413_v51 = vunpack.c.l.bf16 %v2034_v55  ;;  %633 = vmatpush.msrb.mxu3 %v479_v59 }
  0x48   :  { %2487 = vst [vmem:[#allocation51_spill] sm:$0xff] %v2008_v63  ;;  %v2040_v63 = vld [vmem:[#allocation5 + $0x3d0] sm:$0xff]  ;;  %v379_v43 = vunpack.c.l.bf16 %v2032_v54  ;;  %614 = vmatpush.msrb.mxu2 %v445_v42 }
  0x49   :  { %2488 = vst [vmem:[#allocation52_spill] sm:$0xff] %v2010_v62  ;;  %v2038_v62 = vld [vmem:[#allocation5 + $0x348] sm:$0xff]  ;;  %v477_v8 = vunpack.c.l.bf16 %v2040_v63  ;;  %594 = vmatpush.msrb.mxu1 %v413_v51 }
  0x4a   :  { %2489 = vst [vmem:[#allocation53_spill] sm:$0xff] %v2014_v19  ;;  %v2046_v19 = vld [vmem:[#allocation5 + $0x2c8] sm:$0xff]  ;;  %v443_v58 = vunpack.c.l.bf16 %v2038_v62  ;;  %575 = vmatpush.msrb.mxu0 %v379_v43 }
  0x4b   :  { %2490 = vst [vmem:[#allocation54_spill] sm:$0xff] %v2016_v18  ;;  %v2044_v18 = vld [vmem:[#allocation5 + $0x240] sm:$0xff]  ;;  %v411_v9 = vunpack.c.l.bf16 %v2046_v19  ;;  %634 = vmatpush.msrb.mxu3 %v477_v8 }
  0x4c   :  { %2491 = vst [vmem:[#allocation55_spill] sm:$0xff] %v2020_v35  ;;  %v2052_v35 = vld [vmem:[#allocation5 + $0x3c8] sm:$0xff]  ;;  %v377_v27 = vunpack.c.l.bf16 %v2044_v18  ;;  %615 = vmatpush.msrb.mxu2 %v443_v58 }
  0x4d   :  { %2492 = vst [vmem:[#allocation56_spill] sm:$0xff] %v2022_v34  ;;  %v2050_v34 = vld [vmem:[#allocation5 + $0x340] sm:$0xff]  ;;  %v475_v42 = vunpack.c.l.bf16 %v2052_v35  ;;  %595 = vmatpush.msrb.mxu1 %v411_v9 }
  0x4e   :  { %2493 = vst [vmem:[#allocation57_spill] sm:$0xff] %v2026_v47  ;;  %v2058_v47 = vld [vmem:[#allocation5 + $0x2c0] sm:$0xff]  ;;  %v441_v26 = vunpack.c.l.bf16 %v2050_v34  ;;  %576 = vmatpush.msrb.mxu0 %v377_v27 }
  0x4f   :  { %2494 = vst [vmem:[#allocation58_spill] sm:$0xff] %v2028_v50  ;;  %v2056_v50 = vld [vmem:[#allocation5 + $0x238] sm:$0xff]  ;;  %v409_v43 = vunpack.c.l.bf16 %v2058_v47  ;;  %635 = vmatpush.msrb.mxu3 %v475_v42 }
  0x50   :  { %2495 = vst [vmem:[#allocation59_spill] sm:$0xff] %v2032_v54  ;;  %v2064_v54 = vld [vmem:[#allocation5 + $0x3c0] sm:$0xff]  ;;  %v375_v59 = vunpack.c.l.bf16 %v2056_v50  ;;  %616 = vmatpush.msrb.mxu2 %v441_v26 }
  0x51   :  { %2496 = vst [vmem:[#allocation60_spill] sm:$0xff] %v2034_v55  ;;  %v2062_v55 = vld [vmem:[#allocation5 + $0x338] sm:$0xff]  ;;  %v473_v58 = vunpack.c.l.bf16 %v2064_v54  ;;  %596 = vmatpush.msrb.mxu1 %v409_v43 }
  0x52   :  { %2497 = vst [vmem:[#allocation61_spill] sm:$0xff] %v2038_v62  ;;  %v2070_v62 = vld [vmem:[#allocation5 + $0x2b8] sm:$0xff]  ;;  %v439_v51 = vunpack.c.l.bf16 %v2062_v55  ;;  %577 = vmatpush.msrb.mxu0 %v375_v59 }
  0x53   :  { %2498 = vst [vmem:[#allocation62_spill] sm:$0xff] %v2040_v63  ;;  %v2068_v63 = vld [vmem:[#allocation5 + $0x230] sm:$0xff]  ;;  %v407_v27 = vunpack.c.l.bf16 %v2070_v62  ;;  %636 = vmatpush.msrb.mxu3 %v473_v58 }
  0x54   :  { %2499 = vst [vmem:[#allocation63_spill] sm:$0xff] %v2044_v18  ;;  %v2076_v18 = vld [vmem:[#allocation5 + $0x3b8] sm:$0xff]  ;;  %v373_v8 = vunpack.c.l.bf16 %v2068_v63  ;;  %617 = vmatpush.msrb.mxu2 %v439_v51 }
  0x55   :  { %2500 = vst [vmem:[#allocation64_spill] sm:$0xff] %v2046_v19  ;;  %v2074_v19 = vld [vmem:[#allocation5 + $0x330] sm:$0xff]  ;;  %v471_v26 = vunpack.c.l.bf16 %v2076_v18  ;;  %597 = vmatpush.msrb.mxu1 %v407_v27 }
  0x56   :  { %2501 = vst [vmem:[#allocation65_spill] sm:$0xff] %v2050_v34  ;;  %v2082_v34 = vld [vmem:[#allocation5 + $0x2b0] sm:$0xff]  ;;  %v437_v9 = vunpack.c.l.bf16 %v2074_v19  ;;  %578 = vmatpush.msrb.mxu0 %v373_v8 }
  0x57   :  { %2502 = vst [vmem:[#allocation66_spill] sm:$0xff] %v2052_v35  ;;  %v2080_v35 = vld [vmem:[#allocation5 + $0x228] sm:$0xff]  ;;  %v405_v59 = vunpack.c.l.bf16 %v2082_v34  ;;  %637 = vmatpush.msrb.mxu3 %v471_v26  ;;  %v2120_v26 = vld [vmem:[#allocation5 + $0x298] sm:$0xff] }
  0x58   :  { %2503 = vst [vmem:[#allocation67_spill] sm:$0xff] %v2056_v50  ;;  %v2088_v50 = vld [vmem:[#allocation5 + $0x3b0] sm:$0xff]  ;;  %v371_v42 = vunpack.c.l.bf16 %v2080_v35  ;;  %618 = vmatpush.msrb.mxu2 %v437_v9 }
  0x59   :  { %2504 = vst [vmem:[#allocation68_spill] sm:$0xff] %v2058_v47  ;;  %v2086_v47 = vld [vmem:[#allocation5 + $0x328] sm:$0xff]  ;;  %v469_v51 = vunpack.c.l.bf16 %v2088_v50  ;;  %598 = vmatpush.msrb.mxu1 %v405_v59  ;;  %v2126_v59 = vld [vmem:[#allocation5 + $0x398] sm:$0xff] }
  0x5a   :  { %2505 = vst [vmem:[#allocation69_spill] sm:$0xff] %v2062_v55  ;;  %v2094_v55 = vld [vmem:[#allocation5 + $0x2a8] sm:$0xff]  ;;  %v435_v43 = vunpack.c.l.bf16 %v2086_v47  ;;  %579 = vmatpush.msrb.mxu0 %v371_v42 }
  0x5b   :  { %2506 = vst [vmem:[#allocation70_spill] sm:$0xff] %v2064_v54  ;;  %v2092_v54 = vld [vmem:[#allocation5 + $0x220] sm:$0xff]  ;;  %v403_v8 = vunpack.c.l.bf16 %v2094_v55  ;;  %638 = vmatpush.msrb.mxu3 %v469_v51  ;;  %v2135_v51 = vld [vmem:[#allocation2 + $0x18] sm:$0xff] }
  0x5c   :  { %2507 = vst [vmem:[#allocation71_spill] sm:$0xff] %v2068_v63  ;;  %v2100_v63 = vld [vmem:[#allocation5 + $0x3a8] sm:$0xff]  ;;  %v369_v58 = vunpack.c.l.bf16 %v2092_v54  ;;  %619 = vmatpush.msrb.mxu2 %v435_v43  ;;  %565 = vmatmul.f32.vlgmr.msra.gmra.mxu3 %v2135_v51 }
  0x5d   :  { %2508 = vst [vmem:[#allocation72_spill] sm:$0xff] %v2070_v62  ;;  %v2098_v62 = vld [vmem:[#allocation5 + $0x320] sm:$0xff]  ;;  %v467_v9 = vunpack.c.l.bf16 %v2100_v63  ;;  %599 = vmatpush.msrb.mxu1 %v403_v8  ;;  %v2141_v8 = vld [vmem:[#allocation5 + $0x308] sm:$0xff] }
  0x5e   :  { %2509 = vst [vmem:[#allocation73_spill] sm:$0xff] %v2074_v19  ;;  %v2106_v19 = vld [vmem:[#allocation5 + $0x2a0] sm:$0xff]  ;;  %v433_v27 = vunpack.c.l.bf16 %v2098_v62  ;;  %580 = vmatpush.msrb.mxu0 %v369_v58 }
  0x5f   :  { %2510 = vst [vmem:[#allocation74_spill] sm:$0xff] %v2076_v18  ;;  %v2104_v18 = vld [vmem:[#allocation5 + $0x218] sm:$0xff]  ;;  %639 = vmatpush.msrb.mxu3 %v467_v9  ;;  %v2147_v9 = vld [vmem:[#allocation5 + $0x200] sm:$0xff] }
  0x60   :  { %2511 = vst [vmem:[#allocation75_spill] sm:$0xff] %v2080_v35  ;;  %v2112_v35 = vld [vmem:[#allocation5 + $0x3a0] sm:$0xff]  ;;  %v367_v42 = vunpack.c.l.bf16 %v2104_v18  ;;  %620 = vmatpush.msrb.mxu2 %v433_v27 }
  0x61   :  { %2512 = vst [vmem:[#allocation76_spill] sm:$0xff] %v2082_v34  ;;  %v2110_v34 = vld [vmem:[#allocation5 + $0x318] sm:$0xff] }
  0x62   :  { %2513 = vst [vmem:[#allocation77_spill] sm:$0xff] %v2086_v47  ;;  %v2118_v47 = vld [vmem:[#allocation5 + $0x210] sm:$0xff]  ;;  %v431_v43 = vunpack.c.l.bf16 %v2110_v34  ;;  %581 = vmatpush.msrb.mxu0 %v367_v42 }
  0x63   :  { %2514 = vst [vmem:[#allocation78_spill] sm:$0xff] %v2088_v50  ;;  %v2116_v50 = vld [vmem:[#allocation2 + $0x10] sm:$0xff]  ;;  %v365_v58 = vunpack.c.l.bf16 %v2118_v47 }
  0x64   :  { %2515 = vst [vmem:[#allocation79_spill] sm:$0xff] %v2092_v54  ;;  %v2124_v54 = vld [vmem:[#allocation5 + $0x310] sm:$0xff]  ;;  %545 = vmatmul.f32.vlgmr.msra.gmra.mxu2 %v2116_v50 }
  0x65   :  { %2516 = vst [vmem:[#allocation80_spill] sm:$0xff] %v2094_v55  ;;  %v401_v55 = vunpack.c.l.bf16 %v2106_v19  ;;  %v429_v27 = vunpack.c.l.bf16 %v2124_v54  ;;  %621 = vmatpush.msrb.mxu2 %v431_v43  ;;  %582 = vmatpush.msrb.mxu0 %v365_v58  ;;  %v361_v43 = vunpack.c.l.bf16 %v2147_v9 }
  0x66   :  { %2517 = vst [vmem:[#allocation81_spill] sm:$0xff] %v2098_v62  ;;  %v2130_v62 = vld [vmem:[#allocation2] sm:$0xff] }
  0x67   :  { %2518 = vst [vmem:[#allocation82_spill] sm:$0xff] %v2100_v63  ;;  %v465_v63 = vunpack.c.l.bf16 %v2112_v35  ;;  %600 = vmatpush.msrb.mxu1 %v401_v55  ;;  %505 = vmatmul.f32.vlgmr.msra.gmra.mxu0 %v2130_v62  ;;  %v2156_v55 = vld [vmem:[#allocation2 + $0x8] sm:$0xff] }
  0x68   :  { %2519 = vst [vmem:[#allocation83_spill] sm:$0xff] %v2104_v18  ;;  %v2139_v18 = vld [vmem:[#allocation5 + $0x290] sm:$0xff]  ;;  %622 = vmatpush.msrb.mxu2 %v429_v27  ;;  %525 = vmatmul.f32.vlgmr.msra.gmra.mxu1 %v2156_v55 }
  0x69   :  { %2520 = vst [vmem:[#allocation84_spill] sm:$0xff] %v2106_v19  ;;  %v399_v19 = vunpack.c.l.bf16 %v2120_v26  ;;  %640 = vmatpush.msrb.mxu3 %v465_v63  ;;  %v397_v42 = vunpack.c.l.bf16 %v2139_v18 }
  0x6a   :  { %2521 = vst [vmem:[#allocation85_spill] sm:$0xff] %v2110_v34  ;;  %v2145_v34 = vld [vmem:[#allocation5 + $0x390] sm:$0xff] }
  0x6b   :  { %2522 = vst [vmem:[#allocation86_spill] sm:$0xff] %v2112_v35  ;;  %v463_v35 = vunpack.c.l.bf16 %v2126_v59  ;;  %601 = vmatpush.msrb.mxu1 %v399_v19  ;;  %v461_v63 = vunpack.c.l.bf16 %v2145_v34  ;;  %v264_v19 = vunpack.c.h.bf16 %v1778_v0  ;;  %v2181_v0 = vld [vmem:[#allocation2 + $0x20] sm:$0xff] }
  0x6c   :  { %2523 = vst [vmem:[#allocation87_spill] sm:$0xff] %v2116_v50  ;;  %v2150_v50 = vld [vmem:[#allocation5 + $0x288] sm:$0xff] }
  0x6d   :  { %2524 = vst [vmem:[#allocation88_spill] sm:$0xff] %v2118_v47  ;;  %v363_v47 = vunpack.c.l.bf16 %v2132_v46  ;;  %641 = vmatpush.msrb.mxu3 %v463_v35  ;;  %602 = vmatpush.msrb.mxu1 %v397_v42  ;;  %v2174_v35 = vld [vmem:[#allocation2 + $0x30] sm:$0xff]  ;;  %v360_v42 = vunpack.c.h.bf16 %v1790_v7  ;;  %v258_v7 = vunpack.c.h.bf16 %v1804_v16  ;;  %v354_v16 = vunpack.c.h.bf16 %v1824_v29 }
  0x6e   :  { %2525 = vst [vmem:[#allocation89_spill] sm:$0xff] %v2120_v26  ;;  %v2152_v26 = vld [vmem:[#allocation5 + $0x300] sm:$0xff]  ;;  %v316_v29 = vunpack.c.h.bf16 %v1846_v44  ;;  %v282_v44 = vunpack.c.h.bf16 %v1866_v57  ;;  %v244_v57 = vunpack.c.h.bf16 %v1888_v22  ;;  %v2536_v22 = vld [vmem:[#allocation18_spill] sm:$0xff] }
  0x6f   :  { %2526 = vst [vmem:[#allocation90_spill] sm:$0xff] %v2124_v54  ;;  %v2160_v54 = vld [vmem:[#allocation5 + $0x388] sm:$0xff]  ;;  %583 = vmatpush.msrb.mxu0 %v363_v47  ;;  %642 = vmatpush.msrb.mxu3 %v461_v63  ;;  %v262_v47 = vunpack.c.h.bf16 %v1782_v2  ;;  %v294_v2 = vunpack.c.h.bf16 %v1796_v11  ;;  %v356_v11 = vunpack.c.h.bf16 %v1812_v21  ;;  %v318_v21 = vunpack.c.h.bf16 %v1834_v36  ;;  %v2535_v63 = vld [vmem:[#allocation17_spill] sm:$0xff] }
  0x70   :  { %2527 = vst [vmem:[#allocation91_spill] sm:$0xff] %v2126_v59  ;;  %v427_v59 = vunpack.c.l.bf16 %v2141_v8  ;;  %v459_v58 = vunpack.c.l.bf16 %v2160_v54  ;;  %v284_v36 = vunpack.c.h.bf16 %v1854_v49  ;;  %v246_v49 = vunpack.c.h.bf16 %v1876_v3 }
  0x71   :  { %2528 = vst [vmem:[#allocation92_spill] sm:$0xff] %v2130_v62  ;;  %v2166_v62 = vld [vmem:[#allocation5 + $0x280] sm:$0xff]  ;;  %584 = vmatpush.msrb.mxu0 %v361_v43  ;;  %v342_v3 = vunpack.c.h.bf16 %v1896_v31  ;;  %v340_v43 = vunpack.c.h.bf16 %v2536_v22 }
  0x72   :  { %2529 = vst [vmem:[#allocation93_spill] sm:$0xff] %v2132_v46  ;;  %v395_v46 = vunpack.c.l.bf16 %v2150_v50  ;;  %623 = vmatpush.msrb.mxu2 %v427_v59  ;;  %v393_v27 = vunpack.c.l.bf16 %v2166_v62  ;;  %643 = vmatpush.msrb.mxu3 %v459_v58  ;;  %v326_v59 = vunpack.c.h.bf16 %v1788_v6  ;;  %v358_v6 = vunpack.c.h.bf16 %v1802_v15  ;;  %v2537_v58 = vld [vmem:[#allocation19_spill] sm:$0xff] }
  0x73   :  { %2530 = vst [vmem:[#allocation94_spill] sm:$0xff] %v2135_v51  ;;  %v425_v51 = vunpack.c.l.bf16 %v2152_v26  ;;  %649 = vmatpush.msra.mxu0 %v264_v19  ;;  %v320_v15 = vunpack.c.h.bf16 %v1822_v28  ;;  %v286_v28 = vunpack.c.h.bf16 %v1842_v41  ;;  %v248_v41 = vunpack.c.h.bf16 %v1864_v56 }
  0x74   :  { %2531 = vst [vmem:[#allocation95_spill] sm:$0xff] %v2145_v34  ;;  %v328_v34 = vunpack.c.h.bf16 %v1780_v1  ;;  %603 = vmatpush.msrb.mxu1 %v395_v46  ;;  %v2183_v1 = vld [vmem:[#allocation2 + $0x38] sm:$0xff]  ;;  %v260_v46 = vunpack.c.h.bf16 %v1794_v10  ;;  %585 = vmatmul.f32.vlgmr.msrb.gmra.mxu0 %v2181_v0  ;;  %v292_v10 = vunpack.c.h.bf16 %v1806_v17  ;;  %v254_v17 = vunpack.c.h.bf16 %v1828_v32 }
  0x75   :  { %2532 = vst [vmem:[#allocation96_spill] sm:$0xff] %v2152_v26  ;;  %v457_v26 = vunpack.c.l.bf16 %v2168_v39  ;;  %624 = vmatpush.msrb.mxu2 %v425_v51  ;;  %v2192_v51 = vld [vmem:[#allocation2 + $0x28] sm:$0xff]  ;;  %650 = vmatpush.msra.mxu0 %v262_v47  ;;  %v350_v32 = vunpack.c.h.bf16 %v1848_v45  ;;  %v312_v45 = vunpack.c.h.bf16 %v1870_v60  ;;  %v344_v56 = vunpack.c.h.bf16 %v1884_v14 }
  0x76   :  { %2533 = vst [vmem:[#allocation97_spill] sm:$0xff] %v2160_v54  ;;  %v296_v54 = vunpack.c.h.bf16 %v1786_v5  ;;  %625 = vmatmul.f32.vlgmr.msrb.gmra.mxu2 %v2174_v35  ;;  %604 = vmatpush.msrb.mxu1 %v393_v27  ;;  %v324_v5 = vunpack.c.h.bf16 %v1798_v12  ;;  %v256_v12 = vunpack.c.h.bf16 %v1816_v24  ;;  %v352_v24 = vunpack.c.h.bf16 %v1836_v37  ;;  %v2539_v27 = vld [vmem:[#allocation21_spill] sm:$0xff] }
  0x77   :  { %689 = vmatpush.msra.mxu2 %v328_v34  ;;  %644 = vmatpush.msrb.mxu3 %v457_v26  ;;  %v322_v34 = vunpack.c.h.bf16 %v1810_v20  ;;  %v290_v26 = vunpack.c.h.bf16 %v1818_v25  ;;  %v288_v20 = vunpack.c.h.bf16 %v1830_v33  ;;  %v252_v25 = vunpack.c.h.bf16 %v1840_v40 }
  0x78   :  { %645 = vmatmul.f32.vlgmr.msrb.gmra.mxu3 %v2183_v1  ;;  %669 = vmatpush.msra.mxu1 %v296_v54  ;;  %v250_v33 = vunpack.c.h.bf16 %v1852_v48  ;;  %v314_v37 = vunpack.c.h.bf16 %v1858_v52  ;;  %v348_v40 = vunpack.c.h.bf16 %v1860_v53  ;;  %v346_v48 = vunpack.c.h.bf16 %v1872_v61 }
  0x79   :  { %690 = vmatpush.msra.mxu2 %v326_v59  ;;  %709 = vmatpush.msra.mxu3 %v360_v42  ;;  %v280_v52 = vunpack.c.h.bf16 %v1878_v4  ;;  %v310_v53 = vunpack.c.h.bf16 %v1882_v13  ;;  %v278_v60 = vunpack.c.h.bf16 %v1890_v23  ;;  %v308_v61 = vunpack.c.h.bf16 %v1894_v30  ;;  %v2534_v13 = vld [vmem:[#allocation16_spill] sm:$0xff]  ;;  %v2541_v59 = vld [vmem:[#allocation23_spill] sm:$0xff] }
  0x7a   :  { %605 = vmatmul.f32.vlgmr.msrb.gmra.mxu1 %v2192_v51  ;;  %651 = vmatpush.msra.mxu0 %v260_v46  ;;  %v242_v4 = vunpack.c.h.bf16 %v1900_v38  ;;  %v276_v54 = vunpack.c.h.bf16 %v2534_v13  ;;  %v306_v14 = vunpack.c.h.bf16 %v2535_v63  ;;  %v240_v23 = vunpack.c.h.bf16 %v2537_v58  ;;  %v2538_v30 = vld [vmem:[#allocation20_spill] sm:$0xff]  ;;  %v2540_v38 = vld [vmem:[#allocation22_spill] sm:$0xff] }
  0x7b   :  { %670 = vmatpush.msra.mxu1 %v294_v2  ;;  %691 = vmatpush.msra.mxu2 %v324_v5  ;;  %v274_v19 = vunpack.c.h.bf16 %v2538_v30  ;;  %v304_v31 = vunpack.c.h.bf16 %v2539_v27  ;;  %v338_v47 = vunpack.c.h.bf16 %v2540_v38  ;;  %v238_v42 = vunpack.c.h.bf16 %v2541_v59  ;;  %v2542_v46 = vld [vmem:[#allocation24_spill] sm:$0xff]  ;;  %v2543_v5 = vld [vmem:[#allocation25_spill] sm:$0xff] }
  0x7c   :  { %710 = vmatpush.msra.mxu3 %v358_v6  ;;  %652 = vmatpush.msra.mxu0 %v258_v7  ;;  %v272_v2 = vunpack.c.h.bf16 %v2542_v46  ;;  %v302_v6 = vunpack.c.h.bf16 %v2543_v5  ;;  %v2544_v7 = vld [vmem:[#allocation26_spill] sm:$0xff] }
  0x7d   :  { %671 = vmatpush.msra.mxu1 %v292_v10  ;;  %692 = vmatpush.msra.mxu2 %v322_v34  ;;  %v336_v10 = vunpack.c.h.bf16 %v2544_v7  ;;  %v2545_v34 = vld [vmem:[#allocation27_spill] sm:$0xff] }
  0x7e   :  { %711 = vmatpush.msra.mxu3 %v356_v11  ;;  %653 = vmatpush.msra.mxu0 %v256_v12  ;;  %v236_v11 = vunpack.c.h.bf16 %v2545_v34  ;;  %v2546_v12 = vld [vmem:[#allocation28_spill] sm:$0xff] }
  0x7f   :  { %672 = vmatpush.msra.mxu1 %v290_v26  ;;  %693 = vmatpush.msra.mxu2 %v320_v15  ;;  %v270_v26 = vunpack.c.h.bf16 %v2546_v12  ;;  %v2547_v15 = vld [vmem:[#allocation29_spill] sm:$0xff] }
  0x80   :  { %712 = vmatpush.msra.mxu3 %v354_v16  ;;  %654 = vmatpush.msra.mxu0 %v254_v17  ;;  %v300_v16 = vunpack.c.h.bf16 %v2547_v15  ;;  %v2548_v17 = vld [vmem:[#allocation30_spill] sm:$0xff] }
  0x81   :  { %673 = vmatpush.msra.mxu1 %v288_v20  ;;  %694 = vmatpush.msra.mxu2 %v318_v21  ;;  %v334_v20 = vunpack.c.h.bf16 %v2548_v17  ;;  %v2549_v21 = vld [vmem:[#allocation31_spill] sm:$0xff] }
  0x82   :  { %713 = vmatpush.msra.mxu3 %v352_v24  ;;  %655 = vmatpush.msra.mxu0 %v252_v25  ;;  %v234_v24 = vunpack.c.h.bf16 %v2549_v21  ;;  %v2550_v25 = vld [vmem:[#allocation32_spill] sm:$0xff] }
  0x83   :  { %674 = vmatpush.msra.mxu1 %v286_v28  ;;  %695 = vmatpush.msra.mxu2 %v316_v29  ;;  %v268_v28 = vunpack.c.h.bf16 %v2550_v25  ;;  %v2551_v29 = vld [vmem:[#allocation33_spill] sm:$0xff] }
  0x84   :  { %714 = vmatpush.msra.mxu3 %v350_v32  ;;  %656 = vmatpush.msra.mxu0 %v250_v33  ;;  %v298_v32 = vunpack.c.h.bf16 %v2551_v29  ;;  %v2552_v33 = vld [vmem:[#allocation34_spill] sm:$0xff] }
  0x85   :  { %675 = vmatpush.msra.mxu1 %v284_v36  ;;  %696 = vmatpush.msra.mxu2 %v314_v37  ;;  %v332_v36 = vunpack.c.h.bf16 %v2552_v33  ;;  %v2553_v37 = vld [vmem:[#allocation35_spill] sm:$0xff] }
  0x86   :  { %715 = vmatpush.msra.mxu3 %v348_v40  ;;  %657 = vmatpush.msra.mxu0 %v248_v41  ;;  %v392_v40 = vunpack.c.h.bf16 %v2553_v37  ;;  %v2554_v41 = vld [vmem:[#allocation36_spill] sm:$0xff] }
  0x87   :  { %676 = vmatpush.msra.mxu1 %v282_v44  ;;  %697 = vmatpush.msra.mxu2 %v312_v45  ;;  %v456_v44 = vunpack.c.h.bf16 %v2554_v41  ;;  %v2555_v45 = vld [vmem:[#allocation37_spill] sm:$0xff] }
  0x88   :  { %716 = vmatpush.msra.mxu3 %v346_v48  ;;  %658 = vmatpush.msra.mxu0 %v246_v49  ;;  %v266_v48 = vunpack.c.h.bf16 %v2555_v45  ;;  %v2556_v49 = vld [vmem:[#allocation38_spill] sm:$0xff] }
  0x89   :  { %677 = vmatpush.msra.mxu1 %v280_v52  ;;  %698 = vmatpush.msra.mxu2 %v310_v53  ;;  %v330_v52 = vunpack.c.h.bf16 %v2556_v49  ;;  %v2557_v53 = vld [vmem:[#allocation39_spill] sm:$0xff] }
  0x8a   :  { %717 = vmatpush.msra.mxu3 %v344_v56  ;;  %659 = vmatpush.msra.mxu0 %v244_v57  ;;  %v390_v56 = vunpack.c.h.bf16 %v2557_v53  ;;  %v2558_v57 = vld [vmem:[#allocation40_spill] sm:$0xff] }
  0x8b   :  { %678 = vmatpush.msra.mxu1 %v278_v60  ;;  %699 = vmatpush.msra.mxu2 %v308_v61  ;;  %v424_v60 = vunpack.c.h.bf16 %v2558_v57  ;;  %v2559_v61 = vld [vmem:[#allocation41_spill] sm:$0xff] }
  0x8c   :  { %718 = vmatpush.msra.mxu3 %v342_v3  ;;  %660 = vmatpush.msra.mxu0 %v242_v4  ;;  %v454_v3 = vunpack.c.h.bf16 %v2559_v61  ;;  %v2560_v4 = vld [vmem:[#allocation42_spill] sm:$0xff] }
  0x8d   :  { %679 = vmatpush.msra.mxu1 %v276_v54  ;;  %700 = vmatpush.msra.mxu2 %v306_v14  ;;  %v488_v13 = vunpack.c.h.bf16 %v2560_v4  ;;  %v2561_v54 = vld [vmem:[#allocation43_spill] sm:$0xff]  ;;  %v2562_v14 = vld [vmem:[#allocation44_spill] sm:$0xff] }
  0x8e   :  { %719 = vmatpush.msra.mxu3 %v340_v43  ;;  %661 = vmatpush.msra.mxu0 %v240_v23  ;;  %v388_v63 = vunpack.c.h.bf16 %v2561_v54  ;;  %v422_v22 = vunpack.c.h.bf16 %v2562_v14  ;;  %v2563_v43 = vld [vmem:[#allocation45_spill] sm:$0xff]  ;;  %v2564_v23 = vld [vmem:[#allocation46_spill] sm:$0xff] }
  0x8f   :  { %680 = vmatpush.msra.mxu1 %v274_v19  ;;  %701 = vmatpush.msra.mxu2 %v304_v31  ;;  %v452_v58 = vunpack.c.h.bf16 %v2563_v43  ;;  %v486_v30 = vunpack.c.h.bf16 %v2564_v23  ;;  %v2565_v19 = vld [vmem:[#allocation47_spill] sm:$0xff]  ;;  %v2566_v31 = vld [vmem:[#allocation48_spill] sm:$0xff] }
  0x90   :  { %720 = vmatpush.msra.mxu3 %v338_v47  ;;  %662 = vmatpush.msra.mxu0 %v238_v42  ;;  %v386_v27 = vunpack.c.h.bf16 %v2565_v19  ;;  %v420_v38 = vunpack.c.h.bf16 %v2566_v31  ;;  %v2567_v47 = vld [vmem:[#allocation49_spill] sm:$0xff]  ;;  %v2568_v42 = vld [vmem:[#allocation50_spill] sm:$0xff] }
  0x91   :  { %681 = vmatpush.msra.mxu1 %v272_v2  ;;  %702 = vmatpush.msra.mxu2 %v302_v6  ;;  %v450_v59 = vunpack.c.h.bf16 %v2567_v47  ;;  %v484_v46 = vunpack.c.h.bf16 %v2568_v42  ;;  %v2569_v2 = vld [vmem:[#allocation51_spill] sm:$0xff]  ;;  %v2570_v6 = vld [vmem:[#allocation52_spill] sm:$0xff] }
  0x92   :  { %721 = vmatpush.msra.mxu3 %v336_v10  ;;  %663 = vmatpush.msra.mxu0 %v236_v11  ;;  %v384_v5 = vunpack.c.h.bf16 %v2569_v2  ;;  %v418_v7 = vunpack.c.h.bf16 %v2570_v6  ;;  %v2571_v10 = vld [vmem:[#allocation53_spill] sm:$0xff]  ;;  %v2572_v11 = vld [vmem:[#allocation54_spill] sm:$0xff] }
  0x93   :  { %682 = vmatpush.msra.mxu1 %v270_v26  ;;  %703 = vmatpush.msra.mxu2 %v300_v16  ;;  %v448_v34 = vunpack.c.h.bf16 %v2571_v10  ;;  %v482_v12 = vunpack.c.h.bf16 %v2572_v11  ;;  %v2573_v26 = vld [vmem:[#allocation55_spill] sm:$0xff]  ;;  %v2574_v16 = vld [vmem:[#allocation56_spill] sm:$0xff] }
  0x94   :  { %722 = vmatpush.msra.mxu3 %v334_v20  ;;  %664 = vmatpush.msra.mxu0 %v234_v24  ;;  %v382_v15 = vunpack.c.h.bf16 %v2573_v26  ;;  %v416_v17 = vunpack.c.h.bf16 %v2574_v16  ;;  %v2575_v20 = vld [vmem:[#allocation57_spill] sm:$0xff]  ;;  %v2576_v24 = vld [vmem:[#allocation58_spill] sm:$0xff] }
  0x95   :  { %683 = vmatpush.msra.mxu1 %v268_v28  ;;  %704 = vmatpush.msra.mxu2 %v298_v32  ;;  %v446_v21 = vunpack.c.h.bf16 %v2575_v20  ;;  %v480_v25 = vunpack.c.h.bf16 %v2576_v24  ;;  %v2577_v28 = vld [vmem:[#allocation59_spill] sm:$0xff]  ;;  %v2578_v32 = vld [vmem:[#allocation60_spill] sm:$0xff] }
  0x96   :  { %723 = vmatpush.msra.mxu3 %v332_v36  ;;  %729 = vmatpush.msrb.mxu0 %v392_v40  ;;  %v380_v29 = vunpack.c.h.bf16 %v2577_v28  ;;  %v414_v33 = vunpack.c.h.bf16 %v2578_v32  ;;  %v2579_v36 = vld [vmem:[#allocation61_spill] sm:$0xff]  ;;  %v2580_v40 = vld [vmem:[#allocation62_spill] sm:$0xff] }
  0x97   :  { %769 = vmatpush.msrb.mxu2 %v456_v44  ;;  %684 = vmatpush.msra.mxu1 %v266_v48  ;;  %v444_v37 = vunpack.c.h.bf16 %v2579_v36  ;;  %v478_v41 = vunpack.c.h.bf16 %v2580_v40  ;;  %v2581_v44 = vld [vmem:[#allocation63_spill] sm:$0xff]  ;;  %v2582_v48 = vld [vmem:[#allocation64_spill] sm:$0xff]  ;;  %v2604_v28 = vld [vmem:[#allocation85_spill] sm:$0xff] }
  0x98   :  { %724 = vmatpush.msra.mxu3 %v330_v52  ;;  %730 = vmatpush.msrb.mxu0 %v390_v56  ;;  %v378_v45 = vunpack.c.h.bf16 %v2581_v44  ;;  %v412_v49 = vunpack.c.h.bf16 %v2582_v48  ;;  %v2583_v52 = vld [vmem:[#allocation65_spill] sm:$0xff]  ;;  %v2584_v56 = vld [vmem:[#allocation66_spill] sm:$0xff]  ;;  %v2606_v36 = vld [vmem:[#allocation88_spill] sm:$0xff] }
  0x99   :  { %749 = vmatpush.msrb.mxu1 %v424_v60  ;;  %770 = vmatpush.msrb.mxu2 %v454_v3  ;;  %v442_v53 = vunpack.c.h.bf16 %v2583_v52  ;;  %v476_v57 = vunpack.c.h.bf16 %v2584_v56  ;;  %v2585_v60 = vld [vmem:[#allocation67_spill] sm:$0xff]  ;;  %v2586_v3 = vld [vmem:[#allocation68_spill] sm:$0xff]  ;;  %v2605_v32 = vld [vmem:[#allocation86_spill] sm:$0xff] }
  0x9a   :  { %789 = vmatpush.msrb.mxu3 %v488_v13  ;;  %731 = vmatpush.msrb.mxu0 %v388_v63  ;;  %v376_v61 = vunpack.c.h.bf16 %v2585_v60  ;;  %v410_v4 = vunpack.c.h.bf16 %v2586_v3  ;;  %v2587_v13 = vld [vmem:[#allocation69_spill] sm:$0xff]  ;;  %v2588_v63 = vld [vmem:[#allocation70_spill] sm:$0xff]  ;;  %v2609_v48 = vld [vmem:[#allocation92_spill] sm:$0xff]  ;;  %v398_v60 = vunpack.c.h.bf16 %v2139_v18  ;;  %v394_v18 = vunpack.c.h.bf16 %v2166_v62 }
  0x9b   :  { %750 = vmatpush.msrb.mxu1 %v422_v22  ;;  %771 = vmatpush.msrb.mxu2 %v452_v58  ;;  %v440_v54 = vunpack.c.h.bf16 %v2587_v13  ;;  %v474_v14 = vunpack.c.h.bf16 %v2588_v63  ;;  %v2589_v22 = vld [vmem:[#allocation71_spill] sm:$0xff]  ;;  %v2590_v58 = vld [vmem:[#allocation72_spill] sm:$0xff]  ;;  %v2607_v40 = vld [vmem:[#allocation89_spill] sm:$0xff]  ;;  %v362_v13 = vunpack.c.h.bf16 %v2147_v9 }
  0x9c   :  { %790 = vmatpush.msrb.mxu3 %v486_v30  ;;  %732 = vmatpush.msrb.mxu0 %v386_v27  ;;  %v374_v43 = vunpack.c.h.bf16 %v2589_v22  ;;  %v408_v23 = vunpack.c.h.bf16 %v2590_v58  ;;  %v2591_v30 = vld [vmem:[#allocation73_spill] sm:$0xff]  ;;  %v2592_v27 = vld [vmem:[#allocation74_spill] sm:$0xff]  ;;  %v2611_v52 = vld [vmem:[#allocation91_spill] sm:$0xff] }
  0x9d   :  { %751 = vmatpush.msrb.mxu1 %v420_v38  ;;  %772 = vmatpush.msrb.mxu2 %v450_v59  ;;  %v438_v19 = vunpack.c.h.bf16 %v2591_v30  ;;  %v472_v31 = vunpack.c.h.bf16 %v2592_v27  ;;  %v2593_v38 = vld [vmem:[#allocation75_spill] sm:$0xff]  ;;  %v2594_v59 = vld [vmem:[#allocation76_spill] sm:$0xff]  ;;  %v2608_v44 = vld [vmem:[#allocation90_spill] sm:$0xff] }
  0x9e   :  { %791 = vmatpush.msrb.mxu3 %v484_v46  ;;  %733 = vmatpush.msrb.mxu0 %v384_v5  ;;  %v372_v47 = vunpack.c.h.bf16 %v2593_v38  ;;  %v406_v42 = vunpack.c.h.bf16 %v2594_v59  ;;  %v2595_v46 = vld [vmem:[#allocation77_spill] sm:$0xff]  ;;  %v2596_v5 = vld [vmem:[#allocation78_spill] sm:$0xff]  ;;  %v2613_v3 = vld [vmem:[#allocation95_spill] sm:$0xff] }
  0x9f   :  { %752 = vmatpush.msrb.mxu1 %v418_v7  ;;  %773 = vmatpush.msrb.mxu2 %v448_v34  ;;  %v436_v2 = vunpack.c.h.bf16 %v2595_v46  ;;  %v470_v6 = vunpack.c.h.bf16 %v2596_v5  ;;  %v2597_v7 = vld [vmem:[#allocation79_spill] sm:$0xff]  ;;  %v2598_v34 = vld [vmem:[#allocation80_spill] sm:$0xff]  ;;  %v2612_v56 = vld [vmem:[#allocation93_spill] sm:$0xff] }
  0xa0   :  { %792 = vmatpush.msrb.mxu3 %v482_v12  ;;  %734 = vmatpush.msrb.mxu0 %v382_v15  ;;  %v370_v10 = vunpack.c.h.bf16 %v2597_v7  ;;  %v404_v11 = vunpack.c.h.bf16 %v2598_v34  ;;  %v2599_v12 = vld [vmem:[#allocation81_spill] sm:$0xff]  ;;  %v2600_v15 = vld [vmem:[#allocation82_spill] sm:$0xff]  ;;  %v2614_v63 = vld [vmem:[#allocation96_spill] sm:$0xff] }
  0xa1   :  { %753 = vmatpush.msrb.mxu1 %v416_v17  ;;  %774 = vmatpush.msrb.mxu2 %v446_v21  ;;  %v434_v26 = vunpack.c.h.bf16 %v2599_v12  ;;  %v468_v16 = vunpack.c.h.bf16 %v2600_v15  ;;  %v2601_v17 = vld [vmem:[#allocation83_spill] sm:$0xff]  ;;  %v2602_v21 = vld [vmem:[#allocation84_spill] sm:$0xff]  ;;  %v2615_v22 = vld [vmem:[#allocation97_spill] sm:$0xff] }
  0xa2   :  { %793 = vmatpush.msrb.mxu3 %v480_v25  ;;  %735 = vmatpush.msrb.mxu0 %v380_v29  ;;  %v368_v20 = vunpack.c.h.bf16 %v2601_v17  ;;  %v402_v24 = vunpack.c.h.bf16 %v2602_v21  ;;  %v2603_v25 = vld [vmem:[#allocation87_spill] sm:$0xff]  ;;  %v432_v29 = vunpack.c.h.bf16 %v2604_v28  ;;  %v889_v59 = vld [vmem:[#allocation7 + $0x78] sm:$0xff]  ;;  %v888_v5 = vld [vmem:[#allocation7 + $0x70] sm:$0xff] }
  0xa3   :  { %754 = vmatpush.msrb.mxu1 %v414_v33  ;;  %775 = vmatpush.msrb.mxu2 %v444_v37  ;;  %v466_v33 = vunpack.c.h.bf16 %v2605_v32  ;;  %v366_v37 = vunpack.c.h.bf16 %v2606_v36  ;;  %v937_v46 = vunpack.c.h.bf16 %v889_v59  ;;  %v934_v7 = vunpack.c.l.bf16 %v888_v5  ;;  %v887_v34 = vld [vmem:[#allocation7 + $0x68] sm:$0xff] }
  0xa4   :  { %794 = vmatpush.msrb.mxu3 %v478_v41  ;;  %736 = vmatpush.msrb.mxu0 %v378_v45  ;;  %v400_v41 = vunpack.c.h.bf16 %v2607_v40  ;;  %v430_v45 = vunpack.c.h.bf16 %v2608_v44  ;;  %v932_v12 = vunpack.c.l.bf16 %v887_v34 }
  0xa5   :  { %755 = vmatpush.msrb.mxu1 %v412_v49  ;;  %776 = vmatpush.msrb.mxu2 %v442_v53  ;;  %v2610_v49 = vld [vmem:[#allocation94_spill] sm:$0xff]  ;;  %v464_v53 = vunpack.c.h.bf16 %v2611_v52  ;;  %v882_v52 = vld [vmem:[#allocation7 + $0x40] sm:$0xff] }
  0xa6   :  { %795 = vmatpush.msrb.mxu3 %v476_v57  ;;  %737 = vmatpush.msrb.mxu0 %v376_v61  ;;  %v364_v57 = vunpack.c.h.bf16 %v2612_v56  ;;  %v428_v61 = vunpack.c.h.bf16 %v2141_v8  ;;  %v458_v8 = vunpack.c.h.bf16 %v2168_v39  ;;  %v1731_v39 = vmov 8.0  }
  0xa7   :  { %756 = vmatpush.msrb.mxu1 %v410_v4  ;;  %777 = vmatpush.msrb.mxu2 %v440_v54  ;;  %v462_v4 = vunpack.c.h.bf16 %v2613_v3  ;;  %v396_v54 = vunpack.c.h.bf16 %v2150_v50  ;;  %1556 = vrcp.f32 %v1731_v39  ;;  %v922_v56 = vunpack.c.l.bf16 %v882_v52  ;;  %v877_v39 = vld [vmem:[#allocation7 + $0x18] sm:$0xff] }
  0xa8   :  { %796 = vmatpush.msrb.mxu3 %v474_v14  ;;  %738 = vmatpush.msrb.mxu0 %v374_v43  ;;  %v426_v14 = vunpack.c.h.bf16 %v2614_v63  ;;  %v460_v43 = vunpack.c.h.bf16 %v2615_v22  ;;  %v879_v22 = vld [vmem:[#allocation7 + $0x28] sm:$0xff] }
  0xa9   :  { %757 = vmatpush.msrb.mxu1 %v408_v23  ;;  %778 = vmatpush.msrb.mxu2 %v438_v19 }
  0xaa   :  { %797 = vmatpush.msrb.mxu3 %v472_v31  ;;  %739 = vmatpush.msrb.mxu0 %v372_v47 }
  0xab   :  { %758 = vmatpush.msrb.mxu1 %v406_v42  ;;  %779 = vmatpush.msrb.mxu2 %v436_v2 }
  0xac   :  { %798 = vmatpush.msrb.mxu3 %v470_v6  ;;  %705 = vmatmul.f32.vlgmr.msra.gmra.mxu2 %v2603_v25 }
  0xad   :  { %740 = vmatpush.msrb.mxu0 %v370_v10  ;;  %759 = vmatpush.msrb.mxu1 %v404_v11  ;;  %v1557_v19 = vpop.eup %1556  ;;  %v935_v10 = vunpack.c.h.bf16 %v888_v5 }
  0xae   :  { %780 = vmatpush.msrb.mxu2 %v434_v26  ;;  %799 = vmatpush.msrb.mxu3 %v468_v16  ;;  %v822_v38 = vmul.f32 8.0, %v1557_v19  ;;  %v933_v26 = vunpack.c.h.bf16 %v887_v34  ;;  %v886_v16 = vld [vmem:[#allocation7 + $0x60] sm:$0xff]  ;;  %vm826_vm0 = vweird.f32 %v1557_v19 }
  0xaf   :  { %665 = vmatmul.f32.vlgmr.msra.gmra.mxu0 %v2609_v48  ;;  %725 = vmatmul.f32.vlgmr.msra.gmra.mxu3 %v2610_v49  ;;  %v931_v21 = vunpack.c.h.bf16 %v886_v16 }
  0xb0   :  { %741 = vmatpush.msrb.mxu0 %v368_v20  ;;  %760 = vmatpush.msrb.mxu1 %v402_v24  ;;  %v823_v2 = vsub.f32 1.0, %v822_v38  ;;  %v930_v20 = vunpack.c.l.bf16 %v886_v16  ;;  %v885_v24 = vld [vmem:[#allocation7 + $0x58] sm:$0xff] }
  0xb1   :  { %781 = vmatpush.msrb.mxu2 %v432_v29  ;;  %800 = vmatpush.msrb.mxu3 %v466_v33  ;;  %v928_v28 = vunpack.c.l.bf16 %v885_v24  ;;  %v929_v29 = vunpack.c.h.bf16 %v885_v24  ;;  %v884_v33 = vld [vmem:[#allocation7 + $0x50] sm:$0xff] }
  0xb2   :  { %685 = vmatmul.f32.vlgmr.msra.gmra.mxu1 %v2156_v55  ;;  %742 = vmatpush.msrb.mxu0 %v366_v37  ;;  %v824_v15 = vmul.f32 %v1557_v19, %v823_v2  ;;  %v926_v37 = vunpack.c.l.bf16 %v884_v33  ;;  %v927_v40 = vunpack.c.h.bf16 %v884_v33 }
  0xb3   :  { %761 = vmatpush.msrb.mxu1 %v400_v41  ;;  %782 = vmatpush.msrb.mxu2 %v430_v45  ;;  %v883_v41 = vld [vmem:[#allocation7 + $0x48] sm:$0xff] }
  0xb4   :  { %801 = vmatpush.msrb.mxu3 %v464_v53  ;;  %743 = vmatpush.msrb.mxu0 %v364_v57  ;;  %v825_v32 = vadd.f32 %v1557_v19, %v824_v15  ;;  %v924_v45 = vunpack.c.l.bf16 %v883_v41  ;;  %v925_v48 = vunpack.c.h.bf16 %v883_v41  ;;  %v923_v57 = vunpack.c.h.bf16 %v882_v52 }
  0xb5   :  { %762 = vmatpush.msrb.mxu1 %v398_v60  ;;  %783 = vmatpush.msrb.mxu2 %v428_v61  ;;  %v881_v60 = vld [vmem:[#allocation7 + $0x38] sm:$0xff] }
  0xb6   :  { %802 = vmatpush.msrb.mxu3 %v462_v4  ;;  %744 = vmatpush.msrb.mxu0 %v362_v13  ;;  %v2322_v49 = vsel %vm826_vm0, %v1557_v19, %v825_v32  ;;  %v920_v3 = vunpack.c.l.bf16 %v881_v60  ;;  %v921_v4 = vunpack.c.h.bf16 %v881_v60  ;;  %v880_v13 = vld [vmem:[#allocation7 + $0x30] sm:$0xff] }
  0xb7   :  { %763 = vmatpush.msrb.mxu1 %v396_v54  ;;  %784 = vmatpush.msrb.mxu2 %v426_v14  ;;  %v918_v63 = vunpack.c.l.bf16 %v880_v13  ;;  %v919_v14 = vunpack.c.h.bf16 %v880_v13  ;;  %v876_v19 = vld [vmem:[#allocation7 + $0x10] sm:$0xff] }
  0xb8   :  { %803 = vmatpush.msrb.mxu3 %v460_v43  ;;  %745 = vmatmul.f32.vlgmr.msrb.gmra.mxu0 %v2181_v0 }
  0xb9   :  { %785 = vmatmul.f32.vlgmr.msrb.gmra.mxu2 %v2174_v35  ;;  %764 = vmatpush.msrb.mxu1 %v394_v18  ;;  %v916_v18 = vunpack.c.l.bf16 %v879_v22 }
  0xba   :  { %804 = vmatpush.msrb.mxu3 %v458_v8  ;;  %765 = vmatmul.f32.vlgmr.msrb.gmra.mxu1 %v2192_v51  ;;  %v917_v8 = vunpack.c.h.bf16 %v879_v22  ;;  %v901_v22 = vld [vmem:[#allocation7 + $0xd8] sm:$0xff] }
  0xbb   :  { %805 = vmatmul.f32.vlgmr.msrb.gmra.mxu3 %v2183_v1  ;;  %v936_v1 = vunpack.c.l.bf16 %v889_v59  ;;  %1010 = vmatpush.msra.mxu2 %v937_v46 }
  0xbd   :  { %970 = vmatpush.msra.mxu0 %v936_v1  ;;  %1011 = vmatpush.msra.mxu2 %v935_v10 }
  0xbf   :  { %971 = vmatpush.msra.mxu0 %v934_v7  ;;  %1012 = vmatpush.msra.mxu2 %v933_v26 }
  0xc1   :  { %972 = vmatpush.msra.mxu0 %v932_v12  ;;  %1013 = vmatpush.msra.mxu2 %v931_v21 }
  0xc3   :  { %973 = vmatpush.msra.mxu0 %v930_v20  ;;  %1014 = vmatpush.msra.mxu2 %v929_v29 }
  0xc5   :  { %974 = vmatpush.msra.mxu0 %v928_v28  ;;  %1015 = vmatpush.msra.mxu2 %v927_v40 }
  0xc7   :  { %975 = vmatpush.msra.mxu0 %v926_v37  ;;  %1016 = vmatpush.msra.mxu2 %v925_v48  ;;  %v905_v37 = vld [vmem:[#allocation7 + $0xf8] sm:$0xff] }
  0xc8   :  { %v968_v41 = vunpack.c.l.bf16 %v905_v37 }
  0xc9   :  { %976 = vmatpush.msra.mxu0 %v924_v45  ;;  %1017 = vmatpush.msra.mxu2 %v923_v57  ;;  %v904_v45 = vld [vmem:[#allocation7 + $0xf0] sm:$0xff] }
  0xca   :  { %990 = vmatpush.msra.mxu1 %v968_v41  ;;  %v966_v48 = vunpack.c.l.bf16 %v904_v45  ;;  %v967_v52 = vunpack.c.h.bf16 %v904_v45 }
  0xcb   :  { %977 = vmatpush.msra.mxu0 %v922_v56  ;;  %1018 = vmatpush.msra.mxu2 %v921_v4  ;;  %v903_v56 = vld [vmem:[#allocation7 + $0xe8] sm:$0xff]  ;;  %v902_v4 = vld [vmem:[#allocation7 + $0xe0] sm:$0xff] }
  0xcc   :  { %991 = vmatpush.msra.mxu1 %v966_v48  ;;  %v964_v60 = vunpack.c.l.bf16 %v903_v56 }
  0xcd   :  { %978 = vmatpush.msra.mxu0 %v920_v3  ;;  %1019 = vmatpush.msra.mxu2 %v919_v14 }
  0xce   :  { %992 = vmatpush.msra.mxu1 %v964_v60 }
  0xcf   :  { %979 = vmatpush.msra.mxu0 %v918_v63  ;;  %1020 = vmatpush.msra.mxu2 %v917_v8  ;;  %v963_v63 = vunpack.c.h.bf16 %v902_v4 }
  0xd1   :  { %980 = vmatpush.msra.mxu0 %v916_v18  ;;  %v961_v18 = vunpack.c.h.bf16 %v901_v22 }
  0xdf   :  { %v566_v23 = vpop.f32.mrf.mxu3 }
  0xe4   :  { %v506_v62 = vpop.f32.mrf.mxu0 }
  0xe5   :  { %v526_v50 = vpop.f32.mrf.mxu1 }
  0xe6   :  { %v527_v55 = vadd.f32 %v526_v50, %v506_v62  ;;  %v878_v62 = vld [vmem:[#allocation7 + $0x20] sm:$0xff] }
  0xe7   :  { %v546_v9 = vpop.f32.mrf.mxu2 }
  0xe8   :  { %v547_v58 = vadd.f32 %v546_v9, %v527_v55  ;;  %v914_v9 = vunpack.c.l.bf16 %v878_v62  ;;  %v915_v55 = vunpack.c.h.bf16 %v878_v62  ;;  %v900_v62 = vld [vmem:[#allocation7 + $0xd0] sm:$0xff] }
  0xea   :  { %v567_v30 = vadd.f32 %v566_v23, %v547_v58  ;;  %981 = vmatpush.msra.mxu0 %v914_v9  ;;  %1021 = vmatpush.msra.mxu2 %v915_v55  ;;  %v912_v23 = vunpack.c.l.bf16 %v877_v39  ;;  %v959_v9 = vunpack.c.h.bf16 %v900_v62 }
  0xec   :  { %982 = vmatpush.msra.mxu0 %v912_v23 }
  0xf1   :  { %v586_v27 = vpop.f32.mrf.mxu0 }
  0xf2   :  { %v587_v0 = vadd.f32 %v586_v27, %v567_v30  ;;  %v913_v30 = vunpack.c.h.bf16 %v877_v39  ;;  %v899_v39 = vld [vmem:[#allocation7 + $0xc8] sm:$0xff] }
  0xf3   :  { %v957_v23 = vunpack.c.h.bf16 %v899_v39 }
  0xf4   :  { %1022 = vmatpush.msra.mxu2 %v913_v30 }
  0xf7   :  { %v606_v31 = vpop.f32.mrf.mxu1 }
  0xf8   :  { %v607_v47 = vadd.f32 %v606_v31, %v587_v0  ;;  %v910_v0 = vunpack.c.l.bf16 %v876_v19  ;;  %v911_v31 = vunpack.c.h.bf16 %v876_v19  ;;  %v898_v19 = vld [vmem:[#allocation7 + $0xc0] sm:$0xff] }
  0xf9   :  { %v626_v35 = vpop.f32.mrf.mxu2 }
  0xfa   :  { %v627_v51 = vadd.f32 %v626_v35, %v607_v47  ;;  %v875_v35 = vld [vmem:[#allocation7 + $0x8] sm:$0xff]  ;;  %983 = vmatpush.msra.mxu0 %v910_v0  ;;  %1023 = vmatpush.msra.mxu2 %v911_v31  ;;  %v955_v0 = vunpack.c.h.bf16 %v898_v19 }
  0xfb   :  { %v646_v42 = vpop.f32.mrf.mxu3  ;;  %v908_v47 = vunpack.c.l.bf16 %v875_v35  ;;  %v909_v59 = vunpack.c.h.bf16 %v875_v35  ;;  %v897_v35 = vld [vmem:[#allocation7 + $0xb8] sm:$0xff] }
  0xfc   :  { %v647_v6 = vadd.f32 %v646_v42, %v627_v51  ;;  %v874_v51 = vld [vmem:[#allocation7] sm:$0xff] }
  0xfd   :  { %984 = vmatpush.msra.mxu0 %v908_v47  ;;  %1024 = vmatpush.msra.mxu2 %v909_v59  ;;  %v906_v1 = vunpack.c.l.bf16 %v874_v51  ;;  %v907_v46 = vunpack.c.h.bf16 %v874_v51  ;;  %v953_v47 = vunpack.c.h.bf16 %v897_v35  ;;  %v896_v51 = vld [vmem:[#allocation7 + $0xb0] sm:$0xff] }
  0xfe   :  { %v809_v11 = vrot.slane %v647_v6, 4 }
  0xff   :  { %985 = vmatpush.msra.mxu0 %v906_v1  ;;  %1025 = vmatpush.msra.mxu2 %v907_v46  ;;  %v951_v1 = vunpack.c.h.bf16 %v896_v51 }
 0x100   :  { %v810_v17 = vadd.f32 %v809_v11, %v647_v6 }
 0x102   :  { %v811_v25 = vrot.slane %v810_v17, 2 }
 0x104   :  { %v812_v36 = vadd.f32 %v811_v25, %v810_v17 }
 0x106   :  { %v813_v44 = vrot.slane %v812_v36, 1 }
 0x108   :  { %v814_v53 = vadd.f32 %v813_v44, %v812_v36  ;;  %v969_v44 = vunpack.c.h.bf16 %v905_v37 }
 0x10a   :  { %v828_v61 = vmul.f32 %v2322_v49, %v814_v53  ;;  %1030 = vmatpush.msra.mxu3 %v969_v44 }
 0x10c   :  { %v830_v54 = vsub.f32 %v647_v6, %v828_v61  ;;  %1031 = vmatpush.msra.mxu3 %v967_v52  ;;  %v965_v61 = vunpack.c.h.bf16 %v903_v56 }
 0x10e   :  { %v832_v43 = vmul.f32 %v830_v54, %v830_v54  ;;  %1032 = vmatpush.msra.mxu3 %v965_v61 }
 0x110   :  { %v834_v50 = vrot.slane %v832_v43, 4  ;;  %1033 = vmatpush.msra.mxu3 %v963_v63 }
 0x112   :  { %v835_v58 = vadd.f32 %v834_v50, %v832_v43  ;;  %v960_v43 = vunpack.c.l.bf16 %v901_v22  ;;  %1034 = vmatpush.msra.mxu3 %v961_v18  ;;  %v958_v50 = vunpack.c.l.bf16 %v900_v62  ;;  %v1122_v18 = vld [vmem:[#allocation8 + $0x70] sm:$0xff] }
 0x113   :  { %v1169_v62 = vunpack.c.h.bf16 %v1122_v18 }
 0x114   :  { %v836_v27 = vrot.slane %v835_v58, 2  ;;  %1035 = vmatpush.msra.mxu3 %v959_v9 }
 0x116   :  { %v837_v38 = vadd.f32 %v836_v27, %v835_v58  ;;  %v956_v58 = vunpack.c.l.bf16 %v899_v39  ;;  %1036 = vmatpush.msra.mxu3 %v957_v23  ;;  %v954_v27 = vunpack.c.l.bf16 %v898_v19  ;;  %v1120_v39 = vld [vmem:[#allocation8 + $0x60] sm:$0xff] }
 0x117   :  { %v1164_v19 = vunpack.c.l.bf16 %v1120_v39 }
 0x118   :  { %v838_v42 = vrot.slane %v837_v38, 1  ;;  %1037 = vmatpush.msra.mxu3 %v955_v0  ;;  %v1165_v0 = vunpack.c.h.bf16 %v1120_v39 }
 0x11a   :  { %v839_v2 = vadd.f32 %v838_v42, %v837_v38  ;;  %v952_v38 = vunpack.c.l.bf16 %v897_v35  ;;  %1038 = vmatpush.msra.mxu3 %v953_v47  ;;  %v950_v42 = vunpack.c.l.bf16 %v896_v51  ;;  %v1138_v47 = vld [vmem:[#allocation8 + $0xf0] sm:$0xff] }
 0x11b   :  { %v1200_v51 = vunpack.c.l.bf16 %v1138_v47 }
 0x11c   :  { %v846_v5 = vmul.f32 %v839_v2, %v2322_v49  ;;  %v895_v2 = vld [vmem:[#allocation7 + $0xa8] sm:$0xff]  ;;  %1039 = vmatpush.msra.mxu3 %v951_v1  ;;  %v1201_v1 = vunpack.c.h.bf16 %v1138_v47 }
 0x11e   :  { %v848_v6 = vadd.f32 1e-05, %v846_v5  ;;  %v948_v5 = vunpack.c.l.bf16 %v895_v2 }
 0x120   :  { %1558 = vrsqrt.f32 %v848_v6  ;;  %vm856_vm2 = vweird.f32 %v848_v6 }
 0x126   :  { %v1559_v7 = vpop.eup %1558 }
 0x127   :  { %v851_v10 = vmul.f32 %v1559_v7, %v848_v6  ;;  %vm857_vm1 = vweird.f32 %v1559_v7  ;;  %v949_v6 = vunpack.c.h.bf16 %v895_v2  ;;  %v1118_v2 = vld [vmem:[#allocation8 + $0x50] sm:$0xff] }
 0x128   :  { %vm858_vm3 = vmor %vm856_vm2, %vm857_vm1 }
 0x129   :  { %v852_v34 = vmul.f32 %v1559_v7, %v851_v10  ;;  %v894_v10 = vld [vmem:[#allocation7 + $0xa0] sm:$0xff]  ;;  %1040 = vmatpush.msra.mxu3 %v949_v6  ;;  %v1160_v6 = vunpack.c.l.bf16 %v1118_v2 }
 0x12b   :  { %v853_v11 = vmul.f32 0.5, %v852_v34  ;;  %v946_v34 = vunpack.c.l.bf16 %v894_v10 }
 0x12c   :  { %v666_v12 = vpop.f32.mrf.mxu0 }
 0x12d   :  { %v854_v26 = vsub.f32 1.5, %v853_v11  ;;  %v947_v11 = vunpack.c.h.bf16 %v894_v10  ;;  %v1161_v10 = vunpack.c.h.bf16 %v1118_v2 }
 0x12f   :  { %v855_v15 = vmul.f32 %v1559_v7, %v854_v26  ;;  %v686_v16 = vpop.f32.mrf.mxu1  ;;  %v706_v17 = vpop.f32.mrf.mxu2  ;;  %v893_v26 = vld [vmem:[#allocation7 + $0x98] sm:$0xff]  ;;  %1041 = vmatpush.msra.mxu3 %v947_v11 }
 0x130   :  { %v687_v20 = vadd.f32 %v686_v16, %v666_v12  ;;  %v945_v16 = vunpack.c.h.bf16 %v893_v26 }
 0x131   :  { %v859_v21 = vsel %vm858_vm3, %v1559_v7, %v855_v15  ;;  %v944_v15 = vunpack.c.l.bf16 %v893_v26  ;;  %v1136_v26 = vld [vmem:[#allocation8 + $0xe0] sm:$0xff] }
 0x132   :  { %v870_v24 = vmul.f32 %v859_v21, %v830_v54  ;;  %v707_v25 = vadd.f32 %v706_v17, %v687_v20  ;;  %v726_v28 = vpop.f32.mrf.mxu3  ;;  %v962_v54 = vunpack.c.l.bf16 %v902_v4  ;;  %v892_v20 = vld [vmem:[#allocation7 + $0x90] sm:$0xff]  ;;  %1042 = vmatpush.msra.mxu3 %v945_v16 }
 0x133   :  { %v942_v21 = vunpack.c.l.bf16 %v892_v20 }
 0x134   :  { %v727_v29 = vadd.f32 %v726_v28, %v707_v25  ;;  %v872_v32 = vmax.f32 %v870_v24, 0.0  ;;  %993 = vmatpush.msra.mxu1 %v962_v54  ;;  %v943_v24 = vunpack.c.h.bf16 %v892_v20  ;;  %v891_v28 = vld [vmem:[#allocation7 + $0x88] sm:$0xff]  ;;  %v1196_v20 = vunpack.c.l.bf16 %v1136_v26 }
 0x135   :  { %v746_v33 = vpop.f32.mrf.mxu0 }
 0x136   :  { %986 = vmatmul.f32.vlgmr.msra.gmra.mxu0 %v872_v32  ;;  %1026 = vmatmul.f32.vlgmr.msra.gmra.mxu2 %v872_v32  ;;  %v747_v36 = vadd.f32 %v746_v33, %v727_v29  ;;  %v940_v29 = vunpack.c.l.bf16 %v891_v28  ;;  %v941_v32 = vunpack.c.h.bf16 %v891_v28 }
 0x137   :  { %v766_v40 = vpop.f32.mrf.mxu1  ;;  %994 = vmatpush.msra.mxu1 %v960_v43  ;;  %1043 = vmatpush.msra.mxu3 %v943_v24  ;;  %v1197_v24 = vunpack.c.h.bf16 %v1136_v26 }
 0x138   :  { %v767_v53 = vadd.f32 %v766_v40, %v747_v36  ;;  %v890_v36 = vld [vmem:[#allocation7 + $0x80] sm:$0xff] }
 0x139   :  { %995 = vmatpush.msra.mxu1 %v958_v50  ;;  %1044 = vmatpush.msra.mxu3 %v941_v32  ;;  %v938_v37 = vunpack.c.l.bf16 %v890_v36  ;;  %v939_v40 = vunpack.c.h.bf16 %v890_v36  ;;  %v1121_v50 = vld [vmem:[#allocation8 + $0x68] sm:$0xff]  ;;  %v1135_v32 = vld [vmem:[#allocation8 + $0xd8] sm:$0xff] }
 0x13a   :  { %v1166_v9 = vunpack.c.l.bf16 %v1121_v50  ;;  %v1194_v36 = vunpack.c.l.bf16 %v1135_v32 }
 0x13b   :  { %996 = vmatpush.msra.mxu1 %v956_v58  ;;  %1045 = vmatpush.msra.mxu3 %v939_v40  ;;  %v1139_v58 = vld [vmem:[#allocation8 + $0xf8] sm:$0xff]  ;;  %v1195_v40 = vunpack.c.h.bf16 %v1135_v32 }
 0x13c   :  { %v786_v57 = vpop.f32.mrf.mxu2 }
 0x13d   :  { %v787_v3 = vadd.f32 %v786_v57, %v767_v53  ;;  %997 = vmatpush.msra.mxu1 %v954_v27  ;;  %v1202_v27 = vunpack.c.l.bf16 %v1139_v58 }
 0x13e   :  { %v806_v13 = vpop.f32.mrf.mxu3 }
 0x13f   :  { %v807_v14 = vadd.f32 %v806_v13, %v787_v3  ;;  %998 = vmatpush.msra.mxu1 %v952_v38  ;;  %v1119_v38 = vld [vmem:[#allocation8 + $0x58] sm:$0xff] }
 0x141   :  { %v815_v8 = vrot.slane %v807_v14, 4  ;;  %999 = vmatpush.msra.mxu1 %v950_v42  ;;  %v1163_v42 = vunpack.c.h.bf16 %v1119_v38 }
 0x143   :  { %v816_v55 = vadd.f32 %v815_v8, %v807_v14  ;;  %1000 = vmatpush.msra.mxu1 %v948_v5  ;;  %v1168_v8 = vunpack.c.l.bf16 %v1122_v18  ;;  %v1137_v5 = vld [vmem:[#allocation8 + $0xe8] sm:$0xff] }
 0x144   :  { %v1113_v18 = vld [vmem:[#allocation8 + $0x28] sm:$0xff] }
 0x145   :  { %v817_v30 = vrot.slane %v816_v55, 2  ;;  %1001 = vmatpush.msra.mxu1 %v946_v34  ;;  %v1199_v34 = vunpack.c.h.bf16 %v1137_v5 }
 0x147   :  { %v818_v31 = vadd.f32 %v817_v30, %v816_v55  ;;  %1002 = vmatpush.msra.mxu1 %v944_v15  ;;  %v1167_v55 = vunpack.c.h.bf16 %v1121_v50 }
 0x149   :  { %v819_v59 = vrot.slane %v818_v31, 1  ;;  %1003 = vmatpush.msra.mxu1 %v942_v21 }
 0x14b   :  { %v820_v46 = vadd.f32 %v819_v59, %v818_v31  ;;  %1004 = vmatpush.msra.mxu1 %v940_v29  ;;  %v1203_v31 = vunpack.c.h.bf16 %v1139_v58  ;;  %v1162_v59 = vunpack.c.l.bf16 %v1119_v38  ;;  %v1116_v29 = vld [vmem:[#allocation8 + $0x40] sm:$0xff] }
 0x14d   :  { %v829_v7 = vmul.f32 %v2322_v49, %v820_v46  ;;  %1005 = vmatpush.msra.mxu1 %v938_v37  ;;  %1264 = vmatpush.msrb.mxu3 %v1203_v31  ;;  %v1157_v37 = vunpack.c.h.bf16 %v1116_v29 }
 0x14f   :  { %v831_v12 = vsub.f32 %v807_v14, %v829_v7  ;;  %v1123_v14 = vld [vmem:[#allocation8 + $0x78] sm:$0xff]  ;;  %1224 = vmatpush.msrb.mxu1 %v1202_v27  ;;  %v1198_v7 = vunpack.c.l.bf16 %v1137_v5  ;;  %1265 = vmatpush.msrb.mxu3 %v1201_v1 }
 0x150   :  { %v1170_v22 = vunpack.c.l.bf16 %v1123_v14  ;;  %v1171_v43 = vunpack.c.h.bf16 %v1123_v14 }
 0x151   :  { %v833_v17 = vmul.f32 %v831_v12, %v831_v12  ;;  %1225 = vmatpush.msrb.mxu1 %v1200_v51  ;;  %1266 = vmatpush.msrb.mxu3 %v1199_v34  ;;  %v1130_v51 = vld [vmem:[#allocation8 + $0xb0] sm:$0xff] }
 0x152   :  { %1204 = vmatpush.msrb.mxu0 %v1170_v22  ;;  %1244 = vmatpush.msrb.mxu2 %v1171_v43  ;;  %v1184_v1 = vunpack.c.l.bf16 %v1130_v51  ;;  %v1185_v2 = vunpack.c.h.bf16 %v1130_v51 }
 0x153   :  { %v840_v25 = vrot.slane %v833_v17, 4  ;;  %1226 = vmatpush.msrb.mxu1 %v1198_v7  ;;  %1267 = vmatpush.msrb.mxu3 %v1197_v24  ;;  %v1110_v7 = vld [vmem:[#allocation8 + $0x10] sm:$0xff] }
 0x154   :  { %1205 = vmatpush.msrb.mxu0 %v1168_v8  ;;  %1245 = vmatpush.msrb.mxu2 %v1169_v62  ;;  %v1132_v8 = vld [vmem:[#allocation8 + $0xc0] sm:$0xff]  ;;  %v1150_v62 = vunpack.c.l.bf16 %v1113_v18 }
 0x155   :  { %v841_v33 = vadd.f32 %v840_v25, %v833_v17  ;;  %1227 = vmatpush.msrb.mxu1 %v1196_v20  ;;  %1268 = vmatpush.msrb.mxu3 %v1195_v40  ;;  %v1188_v50 = vunpack.c.l.bf16 %v1132_v8 }
 0x156   :  { %1206 = vmatpush.msrb.mxu0 %v1166_v9  ;;  %1246 = vmatpush.msrb.mxu2 %v1167_v55  ;;  %v1151_v9 = vunpack.c.h.bf16 %v1113_v18  ;;  %v1189_v55 = vunpack.c.h.bf16 %v1132_v8 }
 0x157   :  { %v842_v41 = vrot.slane %v841_v33, 2  ;;  %1228 = vmatpush.msrb.mxu1 %v1194_v36  ;;  %v1127_v36 = vld [vmem:[#allocation8 + $0x98] sm:$0xff] }
 0x158   :  { %1207 = vmatpush.msrb.mxu0 %v1164_v19  ;;  %1247 = vmatpush.msrb.mxu2 %v1165_v0  ;;  %v1178_v40 = vunpack.c.l.bf16 %v1127_v36 }
 0x159   :  { %v843_v44 = vadd.f32 %v842_v41, %v841_v33  ;;  %v1156_v33 = vunpack.c.l.bf16 %v1116_v29 }
 0x15a   :  { %1208 = vmatpush.msrb.mxu0 %v1162_v59  ;;  %1248 = vmatpush.msrb.mxu2 %v1163_v42  ;;  %v1111_v59 = vld [vmem:[#allocation8 + $0x18] sm:$0xff] }
 0x15b   :  { %v844_v45 = vrot.slane %v843_v44, 1  ;;  %v1146_v42 = vunpack.c.l.bf16 %v1111_v59 }
 0x15c   :  { %1209 = vmatpush.msrb.mxu0 %v1160_v6  ;;  %1249 = vmatpush.msrb.mxu2 %v1161_v10  ;;  %v1144_v10 = vunpack.c.l.bf16 %v1110_v7 }
 0x15d   :  { %v845_v48 = vadd.f32 %v844_v45, %v843_v44  ;;  %v1115_v45 = vld [vmem:[#allocation8 + $0x38] sm:$0xff] }
 0x15f   :  { %v847_v52 = vmul.f32 %v845_v48, %v2322_v49  ;;  %v1134_v48 = vld [vmem:[#allocation8 + $0xd0] sm:$0xff] }
 0x161   :  { %v849_v53 = vadd.f32 1e-05, %v847_v52  ;;  %v1154_v52 = vunpack.c.l.bf16 %v1115_v45 }
 0x163   :  { %1560 = vrsqrt.f32 %v849_v53  ;;  %vm866_vm5 = vweird.f32 %v849_v53 }
 0x169   :  { %v1561_v56 = vpop.eup %1560 }
 0x16a   :  { %v861_v57 = vmul.f32 %v1561_v56, %v849_v53  ;;  %vm867_vm4 = vweird.f32 %v1561_v56  ;;  %v1192_v53 = vunpack.c.l.bf16 %v1134_v48 }
 0x16b   :  { %vm868_vm6 = vmor %vm866_vm5, %vm867_vm4 }
 0x16c   :  { %v862_v60 = vmul.f32 %v1561_v56, %v861_v57  ;;  %v1193_v57 = vunpack.c.h.bf16 %v1134_v48  ;;  %1229 = vmatpush.msrb.mxu1 %v1192_v53 }
 0x16e   :  { %v863_v61 = vmul.f32 0.5, %v862_v60  ;;  %1269 = vmatpush.msrb.mxu3 %v1193_v57 }
 0x170   :  { %v864_v3 = vsub.f32 1.5, %v863_v61 }
 0x172   :  { %v865_v4 = vmul.f32 %v1561_v56, %v864_v3  ;;  %v1114_v3 = vld [vmem:[#allocation8 + $0x30] sm:$0xff] }
 0x174   :  { %v869_v13 = vsel %vm868_vm6, %v1561_v56, %v865_v4  ;;  %v1155_v56 = vunpack.c.h.bf16 %v1115_v45  ;;  %v1133_v4 = vld [vmem:[#allocation8 + $0xc8] sm:$0xff] }
 0x175   :  { %v871_v54 = vmul.f32 %v869_v13, %v831_v12  ;;  %v1117_v12 = vld [vmem:[#allocation8 + $0x48] sm:$0xff]  ;;  %v1152_v13 = vunpack.c.l.bf16 %v1114_v3  ;;  %v1191_v14 = vunpack.c.h.bf16 %v1133_v4 }
 0x176   :  { %v1158_v17 = vunpack.c.l.bf16 %v1117_v12  ;;  %v1159_v21 = vunpack.c.h.bf16 %v1117_v12 }
 0x177   :  { %v873_v63 = vmax.f32 %v871_v54, 0.0  ;;  %v1190_v54 = vunpack.c.l.bf16 %v1133_v4  ;;  %1270 = vmatpush.msrb.mxu3 %v1191_v14 }
 0x178   :  { %1210 = vmatpush.msrb.mxu0 %v1158_v17  ;;  %1250 = vmatpush.msrb.mxu2 %v1159_v21  ;;  %v1128_v17 = vld [vmem:[#allocation8 + $0xa0] sm:$0xff] }
 0x179   :  { %1006 = vmatmul.f32.vlgmr.msra.gmra.mxu1 %v873_v63  ;;  %1046 = vmatmul.f32.vlgmr.msra.gmra.mxu3 %v873_v63  ;;  %v1153_v63 = vunpack.c.h.bf16 %v1114_v3  ;;  %v1180_v21 = vunpack.c.l.bf16 %v1128_v17 }
 0x17a   :  { %1211 = vmatpush.msrb.mxu0 %v1156_v33  ;;  %1251 = vmatpush.msrb.mxu2 %v1157_v37  ;;  %v1108_v33 = vld [vmem:[#allocation8] sm:$0xff] }
 0x17b   :  { %1230 = vmatpush.msrb.mxu1 %v1190_v54  ;;  %1271 = vmatpush.msrb.mxu3 %v1189_v55  ;;  %v1140_v37 = vunpack.c.l.bf16 %v1108_v33  ;;  %v1124_v54 = vld [vmem:[#allocation8 + $0x80] sm:$0xff] }
 0x17c   :  { %1212 = vmatpush.msrb.mxu0 %v1154_v52  ;;  %1252 = vmatpush.msrb.mxu2 %v1155_v56  ;;  %v1126_v52 = vld [vmem:[#allocation8 + $0x90] sm:$0xff]  ;;  %v1173_v14 = vunpack.c.h.bf16 %v1124_v54 }
 0x17d   :  { %1231 = vmatpush.msrb.mxu1 %v1188_v50  ;;  %v1177_v53 = vunpack.c.h.bf16 %v1126_v52 }
 0x17e   :  { %1213 = vmatpush.msrb.mxu0 %v1152_v13  ;;  %1253 = vmatpush.msrb.mxu2 %v1153_v63  ;;  %v1172_v63 = vunpack.c.l.bf16 %v1124_v54 }
 0x180   :  { %1214 = vmatpush.msrb.mxu0 %v1150_v62  ;;  %1254 = vmatpush.msrb.mxu2 %v1151_v9 }
 0x1b3   :  { %v987_v23 = vpop.f32.mrf.mxu0 }
 0x1b9   :  { %v1027_v15 = vpop.f32.mrf.mxu2 }
 0x1f6   :  { %v1007_v30 = vpop.f32.mrf.mxu1 }
 0x1f7   :  { %v2328_v35 = vadd.f32 %v1007_v30, %v987_v23  ;;  %v1112_v23 = vld [vmem:[#allocation8 + $0x20] sm:$0xff]  ;;  %v1131_v30 = vld [vmem:[#allocation8 + $0xb8] sm:$0xff] }
 0x1f8   :  { %v1148_v19 = vunpack.c.l.bf16 %v1112_v23  ;;  %v1186_v27 = vunpack.c.l.bf16 %v1131_v30  ;;  %v1149_v0 = vunpack.c.h.bf16 %v1112_v23  ;;  %v1187_v31 = vunpack.c.h.bf16 %v1131_v30 }
 0x1f9   :  { %v1050_v46 = vrot.slane %v2328_v35, 4 }
 0x1fa   :  { %1215 = vmatpush.msrb.mxu0 %v1148_v19  ;;  %1232 = vmatpush.msrb.mxu1 %v1186_v27 }
 0x1fb   :  { %v1051_v11 = vadd.f32 %v1050_v46, %v2328_v35  ;;  %v1147_v46 = vunpack.c.h.bf16 %v1111_v59  ;;  %1255 = vmatpush.msrb.mxu2 %v1149_v0  ;;  %1272 = vmatpush.msrb.mxu3 %v1187_v31 }
 0x1fc   :  { %v1047_v16 = vpop.f32.mrf.mxu3  ;;  %1216 = vmatpush.msrb.mxu0 %v1146_v42  ;;  %1233 = vmatpush.msrb.mxu1 %v1184_v1 }
 0x1fd   :  { %v1052_v25 = vrot.slane %v1051_v11, 2  ;;  %v2332_v28 = vadd.f32 %v1047_v16, %v1027_v15  ;;  %1256 = vmatpush.msrb.mxu2 %v1147_v46  ;;  %1273 = vmatpush.msrb.mxu3 %v1185_v2  ;;  %v1109_v16 = vld [vmem:[#allocation8 + $0x8] sm:$0xff] }
 0x1fe   :  { %1217 = vmatpush.msrb.mxu0 %v1144_v10  ;;  %v1142_v20 = vunpack.c.l.bf16 %v1109_v16  ;;  %v1143_v24 = vunpack.c.h.bf16 %v1109_v16  ;;  %v1536_v10 = vld [vmem:[#allocation10 + $0x38] sm:$0xff]  }
 0x1ff   :  { %v1053_v41 = vadd.f32 %v1052_v25, %v1051_v11  ;;  %v1056_v44 = vrot.slane %v2332_v28, 4  ;;  %v1145_v11 = vunpack.c.h.bf16 %v1110_v7  ;;  %v1181_v25 = vunpack.c.h.bf16 %v1128_v17 }
 0x200   :  { %1218 = vmatpush.msrb.mxu0 %v1142_v20 }
 0x201   :  { %v1054_v60 = vrot.slane %v1053_v41, 1  ;;  %v1057_v61 = vadd.f32 %v1056_v44, %v2332_v28  ;;  %1257 = vmatpush.msrb.mxu2 %v1145_v11  ;;  %v1179_v44 = vunpack.c.h.bf16 %v1127_v36  ;;  %v1496_v11 = vunpack.c.l.bf16 %v1536_v10 }
 0x202   :  { %1219 = vmatpush.msrb.mxu0 %v1140_v37 }
 0x203   :  { %v1055_v22 = vadd.f32 %v1054_v60, %v1053_v41  ;;  %v1058_v43 = vrot.slane %v1057_v61, 2  ;;  %v1141_v41 = vunpack.c.h.bf16 %v1108_v33  ;;  %1258 = vmatpush.msrb.mxu2 %v1143_v24  ;;  %v1125_v60 = vld [vmem:[#allocation8 + $0x88] sm:$0xff]  ;;  %v1543_v33 = vld [vmem:[#allocation10 + $0x70] sm:$0xff]  }
 0x204   :  { %v1175_v3 = vunpack.c.h.bf16 %v1125_v60  ;;  %v1534_v24 = vld [vmem:[#allocation10 + $0x28] sm:$0xff]   ;;  %v1525_v37 = vunpack.c.h.bf16 %v1543_v33 }
 0x205   :  { %v1062_v39 = vmul.f32 %v1055_v22, %v2322_v49  ;;  %v1059_v58 = vadd.f32 %v1058_v43, %v1057_v61  ;;  %1259 = vmatpush.msrb.mxu2 %v1141_v41  ;;  %v1174_v61 = vunpack.c.l.bf16 %v1125_v60  ;;  %v1488_v36 = vunpack.c.l.bf16 %v1534_v24  ;;  %v1533_v41 = vld [vmem:[#allocation10 + $0x20] sm:$0xff]  }
 0x207   :  { %v2338_v38 = vsub.f32 %v2328_v35, %v1062_v39  ;;  %v1060_v47 = vrot.slane %v1059_v58, 1  ;;  %v1129_v35 = vld [vmem:[#allocation8 + $0xa8] sm:$0xff] }
 0x208   :  { %v1182_v34 = vunpack.c.l.bf16 %v1129_v35  ;;  %v1183_v12 = vunpack.c.h.bf16 %v1129_v35 }
 0x209   :  { %v1066_v5 = vmul.f32 %v2338_v38, %v2338_v38  ;;  %v1061_v6 = vadd.f32 %v1060_v47, %v1059_v58 }
 0x20a   :  { %1234 = vmatpush.msrb.mxu1 %v1182_v34  ;;  %1274 = vmatpush.msrb.mxu3 %v1183_v12  ;;  %v1497_v34 = vunpack.c.h.bf16 %v1536_v10  ;;  %v1535_v12 = vld [vmem:[#allocation10 + $0x30] sm:$0xff]  }
 0x20b   :  { %v1068_v26 = vrot.slane %v1066_v5, 4  ;;  %v1063_v15 = vmul.f32 %v1061_v6, %v2322_v49  ;;  %v1492_v17 = vunpack.c.l.bf16 %v1535_v12 }
 0x20c   :  { %1235 = vmatpush.msrb.mxu1 %v1180_v21  ;;  %1275 = vmatpush.msrb.mxu3 %v1181_v25  ;;  %v1489_v25 = vunpack.c.h.bf16 %v1534_v24  ;;  %v1537_v24 = vld [vmem:[#allocation10 + $0x40] sm:$0xff]  }
 0x20d   :  { %v1069_v29 = vadd.f32 %v1068_v26, %v1066_v5  ;;  %v2344_v32 = vsub.f32 %v2332_v28, %v1063_v15  ;;  %v1176_v28 = vunpack.c.l.bf16 %v1126_v52  ;;  %1406 = vmatpush.msra.mxu0 %v1497_v34  ;;  %v1544_v26 = vld [vmem:[#allocation10 + $0x78] sm:$0xff]   ;;  %v1524_v52 = vunpack.c.l.bf16 %v1543_v33 }
 0x20e   :  { %1236 = vmatpush.msrb.mxu1 %v1178_v40  ;;  %1276 = vmatpush.msrb.mxu3 %v1179_v44  ;;  %v1529_v20 = vunpack.c.h.bf16 %v1544_v26  ;;  %v1500_v33 = vunpack.c.l.bf16 %v1537_v24 }
 0x20f   :  { %v1070_v45 = vrot.slane %v1069_v29, 2  ;;  %v1067_v48 = vmul.f32 %v2344_v32, %v2344_v32  ;;  %1407 = vmatpush.msra.mxu0 %v1496_v11 }
 0x210   :  { %1237 = vmatpush.msrb.mxu1 %v1176_v28  ;;  %1277 = vmatpush.msrb.mxu3 %v1177_v53 }
 0x211   :  { %v1071_v56 = vadd.f32 %v1070_v45, %v1069_v29  ;;  %v1074_v57 = vrot.slane %v1067_v48, 4  ;;  %v1528_v29 = vunpack.c.l.bf16 %v1544_v26 }
 0x212   :  { %1238 = vmatpush.msrb.mxu1 %v1174_v61  ;;  %1278 = vmatpush.msrb.mxu3 %v1175_v3 }
 0x213   :  { %v1072_v4 = vrot.slane %v1071_v56, 1  ;;  %v1075_v13 = vadd.f32 %v1074_v57, %v1067_v48  ;;  %v1485_v48 = vunpack.c.h.bf16 %v1533_v41  ;;  %v1484_v57 = vunpack.c.l.bf16 %v1533_v41 }
 0x214   :  { %1239 = vmatpush.msrb.mxu1 %v1172_v63  ;;  %1279 = vmatpush.msrb.mxu3 %v1173_v14 }
 0x215   :  { %v1073_v22 = vadd.f32 %v1072_v4, %v1071_v56  ;;  %v1076_v43 = vrot.slane %v1075_v13, 2  ;;  %v1542_v56 = vld [vmem:[#allocation10 + $0x68] sm:$0xff]   ;;  %v1532_v4 = vld [vmem:[#allocation10 + $0x18] sm:$0xff]  }
 0x216   :  { %1426 = vmatpush.msra.mxu1 %v1529_v20  ;;  %v1521_v60 = vunpack.c.h.bf16 %v1542_v56  ;;  %v1520_v54 = vunpack.c.l.bf16 %v1542_v56 }
 0x217   :  { %v1080_v18 = vmul.f32 %v1073_v22, %v2322_v49  ;;  %v1077_v8 = vadd.f32 %v1076_v43, %v1075_v13  ;;  %v1481_v13 = vunpack.c.h.bf16 %v1532_v4  ;;  %v1541_v22 = vld [vmem:[#allocation10 + $0x60] sm:$0xff]   ;;  %v1480_v43 = vunpack.c.l.bf16 %v1532_v4 }
 0x218   :  { %1427 = vmatpush.msra.mxu1 %v1528_v29 }
 0x219   :  { %v1082_v62 = vadd.f32 1e-05, %v1080_v18  ;;  %v1078_v50 = vrot.slane %v1077_v8, 1  ;;  %v1517_v18 = vunpack.c.h.bf16 %v1541_v22 }
 0x21a   :  { %1428 = vmatpush.msra.mxu1 %v1525_v37 }
 0x21b   :  { %1562 = vrsqrt.f32 %v1082_v62  ;;  %v1079_v9 = vadd.f32 %v1078_v50, %v1077_v8  ;;  %vm1090_vm8 = vweird.f32 %v1082_v62  ;;  %v1531_v50 = vld [vmem:[#allocation10 + $0x10] sm:$0xff]  }
 0x21c   :  { %1429 = vmatpush.msra.mxu1 %v1524_v52 }
 0x21d   :  { %v1081_v55 = vmul.f32 %v1079_v9, %v2322_v49  ;;  %v1477_v9 = vunpack.c.h.bf16 %v1531_v50 }
 0x21e   :  { %1430 = vmatpush.msra.mxu1 %v1521_v60 }
 0x21f   :  { %v1083_v39 = vadd.f32 1e-05, %v1081_v55  ;;  %v1516_v55 = vunpack.c.l.bf16 %v1541_v22 }
 0x220   :  { %1431 = vmatpush.msra.mxu1 %v1520_v54 }
 0x221   :  { %v1563_v58 = vpop.eup %1562  ;;  %1564 = vrsqrt.f32 %v1083_v39  ;;  %vm1100_vm11 = vweird.f32 %v1083_v39 }
 0x222   :  { %v1085_v23 = vmul.f32 %v1563_v58, %v1082_v62  ;;  %vm1091_vm7 = vweird.f32 %v1563_v58  ;;  %1432 = vmatpush.msra.mxu1 %v1517_v18 }
 0x223   :  { %vm1092_vm9 = vmor %vm1090_vm8, %vm1091_vm7 }
 0x224   :  { %v1086_v30 = vmul.f32 %v1563_v58, %v1085_v23  ;;  %v1540_v23 = vld [vmem:[#allocation10 + $0x58] sm:$0xff]   ;;  %1433 = vmatpush.msra.mxu1 %v1516_v55 }
 0x226   :  { %v1087_v19 = vmul.f32 0.5, %v1086_v30  ;;  %v1476_v30 = vunpack.c.l.bf16 %v1531_v50 }
 0x227   :  { %v1565_v27 = vpop.eup %1564 }
 0x228   :  { %v1088_v0 = vsub.f32 1.5, %v1087_v19  ;;  %v1095_v31 = vmul.f32 %v1565_v27, %v1083_v39  ;;  %vm1101_vm10 = vweird.f32 %v1565_v27  ;;  %v1513_v19 = vunpack.c.h.bf16 %v1540_v23 }
 0x229   :  { %vm1102_vm12 = vmor %vm1100_vm11, %vm1101_vm10 }
 0x22a   :  { %v1089_v47 = vmul.f32 %v1563_v58, %v1088_v0  ;;  %v1096_v59 = vmul.f32 %v1565_v27, %v1095_v31  ;;  %v1530_v31 = vld [vmem:[#allocation10 + $0x8] sm:$0xff]   ;;  %1434 = vmatpush.msra.mxu1 %v1513_v19 }
 0x22c   :  { %v1093_v51 = vsel %vm1092_vm9, %v1563_v58, %v1089_v47  ;;  %v1097_v42 = vmul.f32 0.5, %v1096_v59  ;;  %v1473_v47 = vunpack.c.h.bf16 %v1530_v31  ;;  %v1512_v59 = vunpack.c.l.bf16 %v1540_v23 }
 0x22d   :  { %v1104_v1 = vmul.f32 %v1093_v51, %v2338_v38  ;;  %v1493_v38 = vunpack.c.h.bf16 %v1535_v12  ;;  %v1538_v12 = vld [vmem:[#allocation10 + $0x48] sm:$0xff]  }
 0x22e   :  { %v1098_v46 = vsub.f32 1.5, %v1097_v42  ;;  %1435 = vmatpush.msra.mxu1 %v1512_v59  ;;  %v1505_v26 = vunpack.c.h.bf16 %v1538_v12 }
 0x22f   :  { %v1106_v2 = vmax.f32 %v1104_v1, 0.0  ;;  %1408 = vmatpush.msra.mxu0 %v1493_v38  ;;  %v1539_v1 = vld [vmem:[#allocation10 + $0x50] sm:$0xff]  }
 0x230   :  { %v1099_v5 = vmul.f32 %v1565_v27, %v1098_v46  ;;  %v1472_v46 = vunpack.c.l.bf16 %v1530_v31  ;;  %v1508_v10 = vunpack.c.l.bf16 %v1539_v1 }
 0x231   :  { %1220 = vmatmul.f32.vlgmr.msrb.gmra.mxu0 %v1106_v2  ;;  %1260 = vmatmul.f32.vlgmr.msrb.gmra.mxu2 %v1106_v2  ;;  %v1509_v2 = vunpack.c.h.bf16 %v1539_v1 }
 0x232   :  { %v1103_v6 = vsel %vm1102_vm12, %v1565_v27, %v1099_v5  ;;  %1409 = vmatpush.msra.mxu0 %v1492_v17  ;;  %v1504_v17 = vunpack.c.l.bf16 %v1538_v12 }
 0x233   :  { %v1105_v7 = vmul.f32 %v1103_v6, %v2344_v32  ;;  %1436 = vmatpush.msra.mxu1 %v1509_v2 }
 0x234   :  { %1410 = vmatpush.msra.mxu0 %v1489_v25  ;;  %v1501_v25 = vunpack.c.h.bf16 %v1537_v24 }
 0x235   :  { %v1107_v35 = vmax.f32 %v1105_v7, 0.0  ;;  %v1467_v7 = vld [vmem:[#allocation10] sm:$0xff]   ;;  %1437 = vmatpush.msra.mxu1 %v1508_v10 }
 0x236   :  { %1411 = vmatpush.msra.mxu0 %v1488_v36  ;;  %v1468_v38 = vunpack.c.l.bf16 %v1467_v7 }
 0x237   :  { %1240 = vmatmul.f32.vlgmr.msrb.gmra.mxu1 %v1107_v35  ;;  %1280 = vmatmul.f32.vlgmr.msrb.gmra.mxu3 %v1107_v35  ;;  %v1469_v35 = vunpack.c.h.bf16 %v1467_v7 }
 0x238   :  { %1412 = vmatpush.msra.mxu0 %v1485_v48  ;;  %1438 = vmatpush.msra.mxu1 %v1505_v26 }
 0x23a   :  { %1413 = vmatpush.msra.mxu0 %v1484_v57  ;;  %1439 = vmatpush.msra.mxu1 %v1504_v17 }
 0x23c   :  { %1414 = vmatpush.msra.mxu0 %v1481_v13  ;;  %1440 = vmatpush.msra.mxu1 %v1501_v25 }
 0x23e   :  { %1415 = vmatpush.msra.mxu0 %v1480_v43  ;;  %1441 = vmatpush.msra.mxu1 %v1500_v33 }
 0x240   :  { %1416 = vmatpush.msra.mxu0 %v1477_v9 }
 0x242   :  { %1417 = vmatpush.msra.mxu0 %v1476_v30 }
 0x244   :  { %1418 = vmatpush.msra.mxu0 %v1473_v47 }
 0x246   :  { %1419 = vmatpush.msra.mxu0 %v1472_v46 }
 0x248   :  { %1420 = vmatpush.msra.mxu0 %v1469_v35 }
 0x24a   :  { %1421 = vmatpush.msra.mxu0 %v1468_v38 }
 0x2ae   :  { %v1221_v15 = vpop.f32.mrf.mxu0 }
 0x2b4   :  { %v1241_v16 = vpop.f32.mrf.mxu1  ;;  %v1261_v44 = vpop.f32.mrf.mxu2 }
 0x2b5   :  { %v1242_v21 = vadd.f32 %v1241_v16, %v1221_v15 }
 0x2b7   :  { %v1284_v32 = vrot.slane %v1242_v21, 4 }
 0x2b9   :  { %v1285_v40 = vadd.f32 %v1284_v32, %v1242_v21 }
 0x2ba   :  { %v1281_v45 = vpop.f32.mrf.mxu3 }
 0x2bb   :  { %v1286_v28 = vrot.slane %v1285_v40, 2  ;;  %v1282_v53 = vadd.f32 %v1281_v45, %v1261_v44 }
 0x2bd   :  { %v1287_v61 = vadd.f32 %v1286_v28, %v1285_v40  ;;  %v1290_v3 = vrot.slane %v1282_v53, 4 }
 0x2bf   :  { %v1288_v63 = vrot.slane %v1287_v61, 1  ;;  %v1291_v14 = vadd.f32 %v1290_v3, %v1282_v53 }
 0x2c1   :  { %v1289_v8 = vadd.f32 %v1288_v63, %v1287_v61  ;;  %v1292_v62 = vrot.slane %v1291_v14, 2 }
 0x2c3   :  { %v1296_v39 = vmul.f32 %v1289_v8, %v2322_v49  ;;  %v1293_v58 = vadd.f32 %v1292_v62, %v1291_v14 }
 0x2c5   :  { %v2353_v27 = vsub.f32 %v1242_v21, %v1296_v39  ;;  %v1294_v0 = vrot.slane %v1293_v58, 1 }
 0x2c7   :  { %v1300_v51 = vmul.f32 %v2353_v27, %v2353_v27  ;;  %v1295_v42 = vadd.f32 %v1294_v0, %v1293_v58 }
 0x2c9   :  { %v1302_v5 = vrot.slane %v1300_v51, 4  ;;  %v1297_v6 = vmul.f32 %v1295_v42, %v2322_v49 }
 0x2cb   :  { %v1303_v34 = vadd.f32 %v1302_v5, %v1300_v51  ;;  %v1299_v11 = vsub.f32 %v1282_v53, %v1297_v6 }
 0x2cd   :  { %v1304_v15 = vrot.slane %v1303_v34, 2  ;;  %v1301_v16 = vmul.f32 %v1299_v11, %v1299_v11 }
 0x2cf   :  { %v1305_v20 = vadd.f32 %v1304_v15, %v1303_v34  ;;  %v1308_v21 = vrot.slane %v1301_v16, 4 }
 0x2d1   :  { %v1306_v29 = vrot.slane %v1305_v20, 1  ;;  %v1309_v32 = vadd.f32 %v1308_v21, %v1301_v16 }
 0x2d3   :  { %v1307_v36 = vadd.f32 %v1306_v29, %v1305_v20  ;;  %v1310_v37 = vrot.slane %v1309_v32, 2 }
 0x2d5   :  { %v1314_v40 = vmul.f32 %v1307_v36, %v2322_v49  ;;  %v1311_v41 = vadd.f32 %v1310_v37, %v1309_v32 }
 0x2d7   :  { %v1316_v44 = vadd.f32 1e-05, %v1314_v40  ;;  %v1312_v45 = vrot.slane %v1311_v41, 1 }
 0x2d9   :  { %1566 = vrsqrt.f32 %v1316_v44  ;;  %v1313_v48 = vadd.f32 %v1312_v45, %v1311_v41  ;;  %vm1324_vm14 = vweird.f32 %v1316_v44 }
 0x2db   :  { %v1315_v52 = vmul.f32 %v1313_v48, %v2322_v49 }
 0x2dd   :  { %v1317_v28 = vadd.f32 1e-05, %v1315_v52 }
 0x2df   :  { %v1567_v53 = vpop.eup %1566  ;;  %1568 = vrsqrt.f32 %v1317_v28  ;;  %vm1334_vm1 = vweird.f32 %v1317_v28 }
 0x2e0   :  { %v1319_v56 = vmul.f32 %v1567_v53, %v1316_v44  ;;  %vm1325_vm13 = vweird.f32 %v1567_v53 }
 0x2e1   :  { %vm1326_vm15 = vmor %vm1324_vm14, %vm1325_vm13 }
 0x2e2   :  { %v1320_v57 = vmul.f32 %v1567_v53, %v1319_v56 }
 0x2e4   :  { %v1321_v60 = vmul.f32 0.5, %v1320_v57 }
 0x2e5   :  { %v1569_v61 = vpop.eup %1568 }
 0x2e6   :  { %v1322_v3 = vsub.f32 1.5, %v1321_v60  ;;  %v1329_v4 = vmul.f32 %v1569_v61, %v1317_v28  ;;  %vm1335_vm0 = vweird.f32 %v1569_v61 }
 0x2e7   :  { %vm1336_vm2 = vmor %vm1334_vm1, %vm1335_vm0 }
 0x2e8   :  { %v1323_v13 = vmul.f32 %v1567_v53, %v1322_v3  ;;  %v1330_v54 = vmul.f32 %v1569_v61, %v1329_v4 }
 0x2ea   :  { %v1327_v63 = vsel %vm1326_vm15, %v1567_v53, %v1323_v13  ;;  %v1331_v14 = vmul.f32 0.5, %v1330_v54 }
 0x2eb   :  { %v1338_v22 = vmul.f32 %v1327_v63, %v2353_v27 }
 0x2ec   :  { %v1332_v43 = vsub.f32 1.5, %v1331_v14 }
 0x2ed   :  { %v1340_v49 = vmax.f32 %v1338_v22, 0.0 }
 0x2ee   :  { %v1333_v18 = vmul.f32 %v1569_v61, %v1332_v43 }
 0x2ef   :  { %1422 = vmatmul.f32.vlgmr.msra.gmra.mxu0 %v1340_v49 }
 0x2f0   :  { %v1337_v8 = vsel %vm1336_vm2, %v1569_v61, %v1333_v18 }
 0x2f1   :  { %v1339_v62 = vmul.f32 %v1337_v8, %v1299_v11 }
 0x2f3   :  { %v1341_v50 = vmax.f32 %v1339_v62, 0.0 }
 0x2f5   :  { %1442 = vmatmul.f32.vlgmr.msra.gmra.mxu1 %v1341_v50 }
 0x36c   :  { %v1423_v9 = vpop.f32.mrf.mxu0 }
 0x372   :  { %v1443_v55 = vpop.f32.mrf.mxu1 }
 0x373   :  { %v1444_v39 = vadd.f32 %v1443_v55, %v1423_v9 }
 0x375   :  { %1446 = vst [vmem:[#allocation11] sm:$0xff] %v1444_v39 }
 0x376   :  { %1457 = dma.vmem_to_hbm [thread:$0]  %s1453_s4, 128, %s1455_s21, [#allocation4]  }
 0x377   :  { %1720 = dma.done.wait [#allocation4], 128  }
 0x378   :  { %1721 = vsyncadd [#allocation4], 4294967168 }
 0x379   :  { %1462 = vsyncpa [#allocation3], 1 }
 0x37a   :  { %1463 = vsyncpa [#allocation6], 1 }
 0x37b   :  { %1464 = vsyncpa [#allocation9], 1 }
 0x37c   :  { %1465 = vsyncpa [#allocation4], 1 }

</bundles_post_ra>
